<compile_context>
chip_gen: v5e
topology: v5e:2x2
jax: 0.10.0
libtpu: 0.0.40
codegen_flags: <defaults>
</compile_context>

<pallas_src>
import math
from functools import partial

import jax
import jax.numpy as jnp
from jax import lax
from jax.experimental import pallas as pl
from jax.experimental.pallas import tpu as pltpu


def _erf(x, approx_recip):
    # Abramowitz & Stegun 7.1.26 rational approximation (max abs err ~1.5e-7).
    # Only mul/add/select + exp (EUP) and optionally an approximate EUP reciprocal,
    # so it lowers cleanly in Mosaic.
    a1, a2, a3, a4, a5 = 0.254829592, -0.284496736, 1.421413741, -1.453152027, 1.061405429
    p = 0.3275911
    ax = jnp.abs(x)
    d = 1.0 + p * ax
    t = pl.reciprocal(d, approx=True) if approx_recip else 1.0 / d
    poly = ((((a5 * t + a4) * t + a3) * t + a2) * t + a1) * t
    y = 1.0 - poly * jnp.exp(-ax * ax)
    return jnp.where(x < 0.0, -y, y)


def _gelu_exact(x, approx_recip):
    # PyTorch nn.GELU() default = exact (erf-based) GELU.
    return 0.5 * x * (1.0 + _erf(x * (1.0 / math.sqrt(2.0)), approx_recip))


def _make_cc_kernel(W, tH, Bblk, Cin, Cin_pad, cdtype, tiled, approx_recip):
    tHW = tH * W
    XW = (tH + 2) * W        # halo_top row + tH center rows + halo_bottom row
    XBW = XW + 2             # +1 slot each side for the (masked) corner kw reads

    def kernel(*refs):
        if tiled:
            (xu_ref, xc_ref, xd_ref, w1_ref, b1_ref, w2_ref, b2_ref,
             o_ref, xbuf_ref, patch_ref) = refs
        else:
            (xc_ref, w1_ref, b1_ref, w2_ref, b2_ref,
             o_ref, xbuf_ref, patch_ref) = refs
            xu_ref = xd_ref = None

        it = pl.program_id(1)
        n_t = pl.num_programs(1)

        # Column-border masks for the kw=0 / kw=2 taps -- built once per step and
        # shared by every tap and every image in the batch block.
        col = lax.broadcasted_iota(jnp.int32, (1, tHW), 1)
        j = (col & (W - 1)) if (W & (W - 1)) == 0 else (col % W)
        not_left = jnp.broadcast_to(j != 0, (Cin_pad, tHW))
        not_right = jnp.broadcast_to(j != (W - 1), (Cin_pad, tHW))
        zero_tap = jnp.zeros((Cin_pad, tHW), cdtype)
        zero_row = jnp.zeros((Cin, W), cdtype)

        for b in range(Bblk):
            # --- stage this image (cast to the MXU compute dtype in-register) ---
            # xbuf[b, c, :] layout: [pad(1) | halo_top(W) | center(tH*W) | halo_bot(W) | pad(1)]
            xbuf_ref[b, 0:Cin, pl.ds(1 + W, tHW)] = xc_ref[b].astype(cdtype)
            if tiled:
                # Halo rows = last row of the tile above / first row of the tile below.
                xbuf_ref[b, 0:Cin, pl.ds(1, W)] = \
                    xu_ref[b, :, pl.ds(tHW - W, W)].astype(cdtype)
                xbuf_ref[b, 0:Cin, pl.ds(1 + W + tHW, W)] = \
                    xd_ref[b, :, pl.ds(0, W)].astype(cdtype)

                @pl.when(it == 0)                 # top image border -> zero halo row
                def _():
                    xbuf_ref[b, 0:Cin, pl.ds(1, W)] = zero_row

                @pl.when(it == n_t - 1)           # bottom image border -> zero halo row
                def _():
                    xbuf_ref[b, 0:Cin, pl.ds(1 + W + tHW, W)] = zero_row
            else:
                xbuf_ref[b, 0:Cin, pl.ds(1, W)] = zero_row
                xbuf_ref[b, 0:Cin, pl.ds(1 + W + tHW, W)] = zero_row

            # Padded channel rows must read as zero in every tap.  Re-zero them every
            # step (cheap; absent when Cin is a multiple of the sublane tile) -- a
            # "zero once at step 0" scheme is unsafe under parallel grid sharding.
            if Cin_pad > Cin:
                xbuf_ref[b, Cin:Cin_pad, :] = jnp.zeros((Cin_pad - Cin, XBW), cdtype)

            # --- im2col: 9 lane-shifted tap slices -> (9*Cin_pad, Bblk*tHW) patch ---
            # Column-wrap masking for kw=0/2 kept as selects: pre-masked xbuf copies
            # would trade 4 VPU selects for 2 extra full-width vst's (net loss on v5e).
            for kh in range(3):
                for kw in range(3):
                    tap = xbuf_ref[b, :, pl.ds(kh * W + kw, tHW)]
                    if kw == 0:
                        tap = jnp.where(not_left, tap, zero_tap)
                    elif kw == 2:
                        tap = jnp.where(not_right, tap, zero_tap)
                    t = kh * 3 + kw
                    patch_ref[pl.ds(t * Cin_pad, Cin_pad), pl.ds(b * tHW, tHW)] = tap

        # --- 3x3 conv as ONE MXU matmul (compute-dtype operands, f32 accumulate) ---
        acc = jnp.dot(w1_ref[...], patch_ref[...], preferred_element_type=jnp.float32)
        h = _gelu_exact(acc + b1_ref[...], approx_recip)      # f32 GELU on the accumulator

        # --- 1x1 conv + bias, lane-dense output store ---
        out = jnp.dot(w2_ref[...], h.astype(cdtype),
                      preferred_element_type=jnp.float32) + b2_ref[...]
        out = out.astype(o_ref.dtype)
        for b in range(Bblk):
            o_ref[b] = out[:, b * tHW:(b + 1) * tHW]

    return kernel


def _round_up(v, m):
    return ((v + m - 1) // m) * m


def _pick_batch_block(B):
    for d in (8, 4, 2, 1):
        if B % d == 0:
            return d
    return 1


def _pick_tile_rows(H, W, Cin_pad, Bblk, itemsize, budget_bytes=8 << 20):
    # Largest row-tile whose im2col patch buffer fits the VMEM budget; full image if
    # it fits.  Blocked last dims must be a multiple of 128 (or the full dim).
    def patch_bytes(th):
        return 9 * Cin_pad * Bblk * th * W * itemsize
    if patch_bytes(H) <= budget_bytes:
        return H
    for th in range(H - 1, 0, -1):
        if H % th == 0 and (th * W) % 128 == 0 and patch_bytes(th) <= budget_bytes:
            return th
    return H


def cc_forward(x_nchw, w1_oihw, b1, w2_oihw, b2, *,
               tile_rows=None, batch_block=None,
               compute_dtype=jnp.bfloat16, approx_reciprocal=True):
    """CC forward: Conv2d(dim->hidden, 3x3, pad 1) -> exact GELU -> Conv2d(hidden->dim, 1x1).

    x_nchw : (B, Cin, H, W)    PyTorch NCHW activations (consumed directly)
    w1_oihw: (Ch, Cin, 3, 3)   PyTorch OIHW weight of the 3x3 conv
    b1     : (Ch,)
    w2_oihw: (Cout, Ch, 1, 1)  PyTorch OIHW weight of the 1x1 conv
    b2     : (Cout,)
    """
    B, Cin, H, W = x_nchw.shape
    Ch = w1_oihw.shape[0]
    Cout = w2_oihw.shape[0]
    HW = H * W
    assert w1_oihw.shape == (Ch, Cin, 3, 3)
    assert w2_oihw.shape == (Cout, Ch, 1, 1)

    cdtype = jnp.dtype(compute_dtype)
    sublane = 8 * (4 // cdtype.itemsize)                 # 8 for f32, 16 for bf16
    Cin_pad = _round_up(Cin, sublane)

    if batch_block is None:
        batch_block = _pick_batch_block(B)
    Bblk = batch_block
    assert B % Bblk == 0, (B, Bblk)

    if tile_rows is None:
        tile_rows = _pick_tile_rows(H, W, Cin_pad, Bblk, cdtype.itemsize)
    tH = tile_rows
    assert H % tH == 0, (H, tH)
    assert tH == H or (tH * W) % 128 == 0, (tH, W)       # lane-aligned blocked last dim

    tHW = tH * W
    nB = B // Bblk
    nT = H // tH
    tiled = nT > 1

    # Lane-dense NC(H*W) view of the NCHW input -- free reshape, no transpose.
    x = x_nchw.reshape(B, Cin, HW)

    # One-off tiny weight repack: (Ch, Cin, 3, 3) -> (Ch, (kh, kw, cin_pad)) in bf16.
    w1_t = jnp.transpose(w1_oihw, (0, 2, 3, 1))          # (Ch, 3, 3, Cin)
    if Cin_pad > Cin:
        w1_t = jnp.pad(w1_t, ((0, 0), (0, 0), (0, 0), (0, Cin_pad - Cin)))
    w1_mat = w1_t.reshape(Ch, 9 * Cin_pad).astype(cdtype)
    w2_mat = w2_oihw.reshape(Cout, Ch).astype(cdtype)
    b1_col = b1.reshape(Ch, 1).astype(jnp.float32)       # biases stay f32
    b2_col = b2.reshape(Cout, 1).astype(jnp.float32)

    kernel = _make_cc_kernel(W, tH, Bblk, Cin, Cin_pad, cdtype, tiled, approx_reciprocal)

    x_center = pl.BlockSpec((Bblk, Cin, tHW), lambda bb, it: (bb, 0, it))
    if tiled:
        # Halo rows from the neighbouring row-tiles; index maps clamp at the image
        # borders (the border halo rows are zeroed in-kernel).
        x_specs = [
            pl.BlockSpec((Bblk, Cin, tHW), lambda bb, it: (bb, 0, jnp.maximum(it - 1, 0))),
            x_center,
            pl.BlockSpec((Bblk, Cin, tHW), lambda bb, it: (bb, 0, jnp.minimum(it + 1, nT - 1))),
        ]
        x_args = (x, x, x)
    else:
        x_specs = [x_center]
        x_args = (x,)

    w_specs = [
        pl.BlockSpec((Ch, 9 * Cin_pad), lambda bb, it: (0, 0)),   # constant -> stays resident
        pl.BlockSpec((Ch, 1), lambda bb, it: (0, 0)),
        pl.BlockSpec((Cout, Ch), lambda bb, it: (0, 0)),
        pl.BlockSpec((Cout, 1), lambda bb, it: (0, 0)),
    ]

    scratch_shapes = [
        pltpu.VMEM((Bblk, Cin_pad, (tH + 2) * W + 2), cdtype),    # zero-halo staging
        pltpu.VMEM((9 * Cin_pad, Bblk * tHW), cdtype),            # im2col patch matrix
    ]

    # Scoped-VMEM budget: double-buffered blocks + resident weights + scratch + slack.
    itemsize = jnp.dtype(x_nchw.dtype).itemsize
    x_blk = Bblk * Cin * tHW * itemsize
    o_blk = Bblk * Cout * tHW * itemsize
    w_bytes = (w1_mat.size + w2_mat.size) * cdtype.itemsize + (Ch + Cout) * 4
    scratch_bytes = (Bblk * Cin_pad * ((tH + 2) * W + 2)
                     + 9 * Cin_pad * Bblk * tHW) * cdtype.itemsize
    vmem_limit = int(max(2 * (len(x_args) * x_blk + o_blk) + 2 * w_bytes
                         + scratch_bytes + (4 << 20), 32 << 20))

    out = pl.pallas_call(
        kernel,
        out_shape=jax.ShapeDtypeStruct((B, Cout, HW), x_nchw.dtype),
        grid=(nB, nT),
        in_specs=x_specs + w_specs,
        out_specs=pl.BlockSpec((Bblk, Cout, tHW), lambda bb, it: (bb, 0, it)),
        scratch_shapes=scratch_shapes,
        compiler_params=pltpu.CompilerParams(
            dimension_semantics=("parallel", "parallel"),
            vmem_limit_bytes=vmem_limit,
        ),
    )(*x_args, w1_mat, b1_col, w2_mat, b2_col)

    # Free reshape back to NCHW (trailing-dim split, no data movement).
    return out.reshape(B, Cout, H, W)


if __name__ == "__main__":
    key = jax.random.PRNGKey(0)
    B, C, H, W = 2, 4, 16, 16
    growth_rate = 2.0
    Ch = int(C * growth_rate)

    k1, k2, k3, k4, k5 = jax.random.split(key, 5)
    x = jax.random.normal(k1, (B, C, H, W), dtype=jnp.float32)

    # Deterministic synthetic params in PyTorch Conv2d layouts / init bounds.
    fan_in1 = C * 3 * 3
    bound1 = 1.0 / math.sqrt(fan_in1)
    w1 = jax.random.uniform(k2, (Ch, C, 3, 3), minval=-bound1, maxval=bound1, dtype=jnp.float32)
    b1 = jax.random.uniform(k3, (Ch,), minval=-bound1, maxval=bound1, dtype=jnp.float32)

    fan_in2 = Ch
    bound2 = 1.0 / math.sqrt(fan_in2)
    w2 = jax.random.uniform(k4, (C, Ch, 1, 1), minval=-bound2, maxval=bound2, dtype=jnp.float32)
    b2 = jax.random.uniform(k5, (C,), minval=-bound2, maxval=bound2, dtype=jnp.float32)

    # Pure-JAX references (exact, and one with the same bf16 operand quantisation
    # as the kernel so the im2col / halo / mask logic can be checked tightly).
    def reference(x, w1, b1, w2, b2, quantize=False):
        cast = (lambda a: a.astype(jnp.bfloat16).astype(jnp.float32)) if quantize else (lambda a: a)
        y = lax.conv_general_dilated(cast(x), cast(w1), (1, 1), ((1, 1), (1, 1)),
                                     dimension_numbers=("NCHW", "OIHW", "NCHW"),
                                     precision=lax.Precision.HIGHEST)
        y = jax.nn.gelu(y + b1.reshape(1, -1, 1, 1), approximate=False)
        y = cast(y)
        z = lax.conv_general_dilated(y, cast(w2), (1, 1), ((0, 0), (0, 0)),
                                     dimension_numbers=("NCHW", "OIHW", "NCHW"),
                                     precision=lax.Precision.HIGHEST)
        return z + b2.reshape(1, -1, 1, 1)

    ref_exact = reference(x, w1, b1, w2, b2, quantize=False)
    ref_bf16 = reference(x, w1, b1, w2, b2, quantize=True)

    # 1) bf16 MXU path, spatially tiled (tH=8 -> 2 row tiles: exercises the halo DMA,
    #    border zeroing and both-parallel grid), batch-blocked (Bblk=2).
    f_tiled = jax.jit(partial(cc_forward, tile_rows=8))
    out_tiled = jax.block_until_ready(f_tiled(x, w1, b1, w2, b2))

    # 2) bf16 MXU path, whole image per step, one image per step (untiled code path).
    f_whole = jax.jit(partial(cc_forward, batch_block=1))
    out_whole = jax.block_until_ready(f_whole(x, w1, b1, w2, b2))

    # 3) f32 compute path with exact divide -- tight logic check against the exact ref.
    f_f32 = jax.jit(partial(cc_forward, tile_rows=8, compute_dtype=jnp.float32,
                            approx_reciprocal=False))
    out_f32 = jax.block_until_ready(f_f32(x, w1, b1, w2, b2))

    def maxerr(a, b):
        return float(jnp.max(jnp.abs(a - b)))

    assert out_tiled.shape == (B, C, H, W) and out_tiled.dtype == jnp.float32

    # bf16 runs: tight vs the bf16-quantised reference (isolates kernel logic; the
    # slack covers the approximate EUP reciprocal), loose vs the exact f32 reference
    # (bounded by bf16 operand quantisation).
    e1q, e1x = maxerr(out_tiled, ref_bf16), maxerr(out_tiled, ref_exact)
    e2q, e2x = maxerr(out_whole, ref_bf16), maxerr(out_whole, ref_exact)
    e3 = maxerr(out_f32, ref_exact)
    assert e1q < 2e-2 and e1x < 6e-2, (e1q, e1x)
    assert e2q < 2e-2 and e2x < 6e-2, (e2q, e2x)
    assert e3 < 2e-3, e3
    print("KERNEL_OK")
</pallas_src>

<mosaic_0001>
module attributes {stable_mosaic.version = 11 : i64} {
  func.func @kernel(%arg0: i32, %arg1: i32, %arg2: memref<2x4x128xf32, #tpu.memory_space<vmem>>, %arg3: memref<2x4x128xf32, #tpu.memory_space<vmem>>, %arg4: memref<2x4x128xf32, #tpu.memory_space<vmem>>, %arg5: memref<8x144xbf16, #tpu.memory_space<vmem>>, %arg6: memref<8x1xf32, #tpu.memory_space<vmem>>, %arg7: memref<4x8xbf16, #tpu.memory_space<vmem>>, %arg8: memref<4x1xf32, #tpu.memory_space<vmem>>, %arg9: memref<2x4x128xf32, #tpu.memory_space<vmem>>, %arg10: memref<2x16x162xbf16, #tpu.memory_space<vmem>>, %arg11: memref<144x256xbf16, #tpu.memory_space<vmem>>) attributes {dimension_semantics = [#tpu.dimension_semantics<parallel>, #tpu.dimension_semantics<parallel>], iteration_bounds = array<i64: 1, 2>, scalar_prefetch = 0 : i64, scratch_operands = 2 : i64, tpu.core_type = #tpu.core_type<tc>, window_params = [{transform_indices = @transform_0, window_bounds = array<i64: 2, 4, 128>}, {transform_indices = @transform_1, window_bounds = array<i64: 2, 4, 128>}, {transform_indices = @transform_2, window_bounds = array<i64: 2, 4, 128>}, {pipeline_mode = #tpu.pipeline_mode<synchronous>, transform_indices = @transform_3, window_bounds = array<i64: 8, 144>}, {pipeline_mode = #tpu.pipeline_mode<synchronous>, transform_indices = @transform_4, window_bounds = array<i64: 8, 1>}, {pipeline_mode = #tpu.pipeline_mode<synchronous>, transform_indices = @transform_5, window_bounds = array<i64: 4, 8>}, {pipeline_mode = #tpu.pipeline_mode<synchronous>, transform_indices = @transform_6, window_bounds = array<i64: 4, 1>}, {transform_indices = @transform_7, window_bounds = array<i64: 2, 4, 128>}]} {
    %0 = tpu.iota {dimensions = array<i32: 1>} : vector<1x128xi32>
    %c15_i32 = arith.constant 15 : i32
    %1 = vector.broadcast %c15_i32 : i32 to vector<1x128xi32>
    %2 = arith.andi %0, %1 : vector<1x128xi32>
    %c0_i32 = arith.constant 0 : i32
    %3 = vector.broadcast %c0_i32 : i32 to vector<1x128xi32>
    %4 = arith.cmpi ne, %2, %3 : vector<1x128xi32>
    %5 = vector.shape_cast %4 : vector<1x128xi1> to vector<1x128xi1>
    %6 = vector.broadcast %5 : vector<1x128xi1> to vector<16x128xi1>
    %c15_i32_0 = arith.constant 15 : i32
    %7 = vector.broadcast %c15_i32_0 : i32 to vector<1x128xi32>
    %8 = arith.cmpi ne, %2, %7 : vector<1x128xi32>
    %9 = vector.shape_cast %8 : vector<1x128xi1> to vector<1x128xi1>
    %10 = vector.broadcast %9 : vector<1x128xi1> to vector<16x128xi1>
    %cst = arith.constant 0.000000e+00 : bf16
    %11 = vector.broadcast %cst : bf16 to vector<16x128xbf16>
    %cst_1 = arith.constant 0.000000e+00 : bf16
    %12 = vector.broadcast %cst_1 : bf16 to vector<4x16xbf16>
    %c0 = arith.constant 0 : index
    %c0_2 = arith.constant 0 : index
    %c0_3 = arith.constant 0 : index
    %13 = vector.load %arg3[%c0, %c0_2, %c0_3] : memref<2x4x128xf32, #tpu.memory_space<vmem>>, vector<1x4x128xf32>
    %14 = vector.shape_cast %13 : vector<1x4x128xf32> to vector<4x128xf32>
    %15 = arith.truncf %14 : vector<4x128xf32> to vector<4x128xbf16>
    %c0_4 = arith.constant 0 : index
    %c0_5 = arith.constant 0 : index
    %c17 = arith.constant 17 : index
    %16 = vector.load %arg10[%c0_4, %c0_5, %c17] : memref<2x16x162xbf16, #tpu.memory_space<vmem>>, vector<1x4x128xbf16>
    %17 = vector.shape_cast %16 : vector<1x4x128xbf16> to vector<4x128xbf16>
    %18 = vector.shape_cast %15 : vector<4x128xbf16> to vector<1x4x128xbf16>
    tpu.vector_store %arg10[%c0_4, %c0_5, %c17], %18 {strides = array<i32>} : memref<2x16x162xbf16, #tpu.memory_space<vmem>>, vector<1x4x128xbf16>,
    %c0_6 = arith.constant 0 : index
    %c0_7 = arith.constant 0 : index
    %c112 = arith.constant 112 : index
    %19 = vector.load %arg2[%c0_6, %c0_7, %c112] : memref<2x4x128xf32, #tpu.memory_space<vmem>>, vector<1x4x16xf32>
    %20 = vector.shape_cast %19 : vector<1x4x16xf32> to vector<4x16xf32>
    %21 = arith.truncf %20 : vector<4x16xf32> to vector<4x16xbf16>
    %c0_8 = arith.constant 0 : index
    %c0_9 = arith.constant 0 : index
    %c1 = arith.constant 1 : index
    %22 = vector.load %arg10[%c0_8, %c0_9, %c1] : memref<2x16x162xbf16, #tpu.memory_space<vmem>>, vector<1x4x16xbf16>
    %23 = vector.shape_cast %22 : vector<1x4x16xbf16> to vector<4x16xbf16>
    %24 = vector.shape_cast %21 : vector<4x16xbf16> to vector<1x4x16xbf16>
    tpu.vector_store %arg10[%c0_8, %c0_9, %c1], %24 {strides = array<i32>} : memref<2x16x162xbf16, #tpu.memory_space<vmem>>, vector<1x4x16xbf16>,
    %c0_10 = arith.constant 0 : index
    %c0_11 = arith.constant 0 : index
    %c0_12 = arith.constant 0 : index
    %25 = vector.load %arg4[%c0_10, %c0_11, %c0_12] : memref<2x4x128xf32, #tpu.memory_space<vmem>>, vector<1x4x16xf32>
    %26 = vector.shape_cast %25 : vector<1x4x16xf32> to vector<4x16xf32>
    %27 = arith.truncf %26 : vector<4x16xf32> to vector<4x16xbf16>
    %c0_13 = arith.constant 0 : index
    %c0_14 = arith.constant 0 : index
    %c145 = arith.constant 145 : index
    %28 = vector.load %arg10[%c0_13, %c0_14, %c145] : memref<2x16x162xbf16, #tpu.memory_space<vmem>>, vector<1x4x16xbf16>
    %29 = vector.shape_cast %28 : vector<1x4x16xbf16> to vector<4x16xbf16>
    %30 = vector.shape_cast %27 : vector<4x16xbf16> to vector<1x4x16xbf16>
    tpu.vector_store %arg10[%c0_13, %c0_14, %c145], %30 {strides = array<i32>} : memref<2x16x162xbf16, #tpu.memory_space<vmem>>, vector<1x4x16xbf16>,
    %c0_i32_15 = arith.constant 0 : i32
    %31 = arith.cmpi eq, %arg1, %c0_i32_15 : i32
    %32 = arith.extui %31 : i1 to i32
    %c0_i32_16 = arith.constant 0 : i32
    %33 = arith.cmpi ne, %32, %c0_i32_16 : i32
    scf.if %33 {
      %c0_158 = arith.constant 0 : index
      %c0_159 = arith.constant 0 : index
      %c1_160 = arith.constant 1 : index
      %194 = vector.load %arg10[%c0_158, %c0_159, %c1_160] : memref<2x16x162xbf16, #tpu.memory_space<vmem>>, vector<1x4x16xbf16>
      %195 = vector.shape_cast %194 : vector<1x4x16xbf16> to vector<4x16xbf16>
      %196 = vector.shape_cast %12 : vector<4x16xbf16> to vector<1x4x16xbf16>
      tpu.vector_store %arg10[%c0_158, %c0_159, %c1_160], %196 {strides = array<i32>} : memref<2x16x162xbf16, #tpu.memory_space<vmem>>, vector<1x4x16xbf16>,
    } else {
    }
    %c1_i32 = arith.constant 1 : i32
    %34 = arith.cmpi eq, %arg1, %c1_i32 : i32
    %35 = arith.extui %34 : i1 to i32
    %c0_i32_17 = arith.constant 0 : i32
    %36 = arith.cmpi ne, %35, %c0_i32_17 : i32
    scf.if %36 {
      %c0_158 = arith.constant 0 : index
      %c0_159 = arith.constant 0 : index
      %c145_160 = arith.constant 145 : index
      %194 = vector.load %arg10[%c0_158, %c0_159, %c145_160] : memref<2x16x162xbf16, #tpu.memory_space<vmem>>, vector<1x4x16xbf16>
      %195 = vector.shape_cast %194 : vector<1x4x16xbf16> to vector<4x16xbf16>
      %196 = vector.shape_cast %12 : vector<4x16xbf16> to vector<1x4x16xbf16>
      tpu.vector_store %arg10[%c0_158, %c0_159, %c145_160], %196 {strides = array<i32>} : memref<2x16x162xbf16, #tpu.memory_space<vmem>>, vector<1x4x16xbf16>,
    } else {
    }
    %cst_18 = arith.constant 0.000000e+00 : bf16
    %37 = vector.broadcast %cst_18 : bf16 to vector<12x162xbf16>
    %c0_19 = arith.constant 0 : index
    %c4 = arith.constant 4 : index
    %c0_20 = arith.constant 0 : index
    %38 = vector.load %arg10[%c0_19, %c4, %c0_20] : memref<2x16x162xbf16, #tpu.memory_space<vmem>>, vector<1x12x162xbf16>
    %39 = vector.shape_cast %38 : vector<1x12x162xbf16> to vector<12x162xbf16>
    %40 = vector.shape_cast %37 : vector<12x162xbf16> to vector<1x12x162xbf16>
    tpu.vector_store %arg10[%c0_19, %c4, %c0_20], %40 {strides = array<i32>} : memref<2x16x162xbf16, #tpu.memory_space<vmem>>, vector<1x12x162xbf16>,
    %c0_21 = arith.constant 0 : index
    %c0_22 = arith.constant 0 : index
    %c0_23 = arith.constant 0 : index
    %41 = vector.load %arg10[%c0_21, %c0_22, %c0_23] : memref<2x16x162xbf16, #tpu.memory_space<vmem>>, vector<1x16x128xbf16>
    %42 = vector.shape_cast %41 : vector<1x16x128xbf16> to vector<16x128xbf16>
    %43 = arith.select %6, %42, %11 : vector<16x128xi1>, vector<16x128xbf16>
    %c0_24 = arith.constant 0 : index
    %c0_25 = arith.constant 0 : index
    %44 = vector.load %arg11[%c0_24, %c0_25] : memref<144x256xbf16, #tpu.memory_space<vmem>>, vector<16x128xbf16>
    tpu.vector_store %arg11[%c0_24, %c0_25], %43 {strides = array<i32>} : memref<144x256xbf16, #tpu.memory_space<vmem>>, vector<16x128xbf16>,
    %c0_26 = arith.constant 0 : index
    %c0_27 = arith.constant 0 : index
    %c1_28 = arith.constant 1 : index
    %45 = vector.load %arg10[%c0_26, %c0_27, %c1_28] : memref<2x16x162xbf16, #tpu.memory_space<vmem>>, vector<1x16x128xbf16>
    %46 = vector.shape_cast %45 : vector<1x16x128xbf16> to vector<16x128xbf16>
    %c16 = arith.constant 16 : index
    %c0_29 = arith.constant 0 : index
    %47 = vector.load %arg11[%c16, %c0_29] : memref<144x256xbf16, #tpu.memory_space<vmem>>, vector<16x128xbf16>
    tpu.vector_store %arg11[%c16, %c0_29], %46 {strides = array<i32>} : memref<144x256xbf16, #tpu.memory_space<vmem>>, vector<16x128xbf16>,
    %c0_30 = arith.constant 0 : index
    %c0_31 = arith.constant 0 : index
    %c2 = arith.constant 2 : index
    %48 = vector.load %arg10[%c0_30, %c0_31, %c2] : memref<2x16x162xbf16, #tpu.memory_space<vmem>>, vector<1x16x128xbf16>
    %49 = vector.shape_cast %48 : vector<1x16x128xbf16> to vector<16x128xbf16>
    %50 = arith.select %10, %49, %11 : vector<16x128xi1>, vector<16x128xbf16>
    %c32 = arith.constant 32 : index
    %c0_32 = arith.constant 0 : index
    %51 = vector.load %arg11[%c32, %c0_32] : memref<144x256xbf16, #tpu.memory_space<vmem>>, vector<16x128xbf16>
    tpu.vector_store %arg11[%c32, %c0_32], %50 {strides = array<i32>} : memref<144x256xbf16, #tpu.memory_space<vmem>>, vector<16x128xbf16>,
    %c0_33 = arith.constant 0 : index
    %c0_34 = arith.constant 0 : index
    %c16_35 = arith.constant 16 : index
    %52 = vector.load %arg10[%c0_33, %c0_34, %c16_35] : memref<2x16x162xbf16, #tpu.memory_space<vmem>>, vector<1x16x128xbf16>
    %53 = vector.shape_cast %52 : vector<1x16x128xbf16> to vector<16x128xbf16>
    %54 = arith.select %6, %53, %11 : vector<16x128xi1>, vector<16x128xbf16>
    %c48 = arith.constant 48 : index
    %c0_36 = arith.constant 0 : index
    %55 = vector.load %arg11[%c48, %c0_36] : memref<144x256xbf16, #tpu.memory_space<vmem>>, vector<16x128xbf16>
    tpu.vector_store %arg11[%c48, %c0_36], %54 {strides = array<i32>} : memref<144x256xbf16, #tpu.memory_space<vmem>>, vector<16x128xbf16>,
    %c0_37 = arith.constant 0 : index
    %c0_38 = arith.constant 0 : index
    %c17_39 = arith.constant 17 : index
    %56 = vector.load %arg10[%c0_37, %c0_38, %c17_39] : memref<2x16x162xbf16, #tpu.memory_space<vmem>>, vector<1x16x128xbf16>
    %57 = vector.shape_cast %56 : vector<1x16x128xbf16> to vector<16x128xbf16>
    %c64 = arith.constant 64 : index
    %c0_40 = arith.constant 0 : index
    %58 = vector.load %arg11[%c64, %c0_40] : memref<144x256xbf16, #tpu.memory_space<vmem>>, vector<16x128xbf16>
    tpu.vector_store %arg11[%c64, %c0_40], %57 {strides = array<i32>} : memref<144x256xbf16, #tpu.memory_space<vmem>>, vector<16x128xbf16>,
    %c0_41 = arith.constant 0 : index
    %c0_42 = arith.constant 0 : index
    %c18 = arith.constant 18 : index
    %59 = vector.load %arg10[%c0_41, %c0_42, %c18] : memref<2x16x162xbf16, #tpu.memory_space<vmem>>, vector<1x16x128xbf16>
    %60 = vector.shape_cast %59 : vector<1x16x128xbf16> to vector<16x128xbf16>
    %61 = arith.select %10, %60, %11 : vector<16x128xi1>, vector<16x128xbf16>
    %c80 = arith.constant 80 : index
    %c0_43 = arith.constant 0 : index
    %62 = vector.load %arg11[%c80, %c0_43] : memref<144x256xbf16, #tpu.memory_space<vmem>>, vector<16x128xbf16>
    tpu.vector_store %arg11[%c80, %c0_43], %61 {strides = array<i32>} : memref<144x256xbf16, #tpu.memory_space<vmem>>, vector<16x128xbf16>,
    %c0_44 = arith.constant 0 : index
    %c0_45 = arith.constant 0 : index
    %c32_46 = arith.constant 32 : index
    %63 = vector.load %arg10[%c0_44, %c0_45, %c32_46] : memref<2x16x162xbf16, #tpu.memory_space<vmem>>, vector<1x16x128xbf16>
    %64 = vector.shape_cast %63 : vector<1x16x128xbf16> to vector<16x128xbf16>
    %65 = arith.select %6, %64, %11 : vector<16x128xi1>, vector<16x128xbf16>
    %c96 = arith.constant 96 : index
    %c0_47 = arith.constant 0 : index
    %66 = vector.load %arg11[%c96, %c0_47] : memref<144x256xbf16, #tpu.memory_space<vmem>>, vector<16x128xbf16>
    tpu.vector_store %arg11[%c96, %c0_47], %65 {strides = array<i32>} : memref<144x256xbf16, #tpu.memory_space<vmem>>, vector<16x128xbf16>,
    %c0_48 = arith.constant 0 : index
    %c0_49 = arith.constant 0 : index
    %c33 = arith.constant 33 : index
    %67 = vector.load %arg10[%c0_48, %c0_49, %c33] : memref<2x16x162xbf16, #tpu.memory_space<vmem>>, vector<1x16x128xbf16>
    %68 = vector.shape_cast %67 : vector<1x16x128xbf16> to vector<16x128xbf16>
    %c112_50 = arith.constant 112 : index
    %c0_51 = arith.constant 0 : index
    %69 = vector.load %arg11[%c112_50, %c0_51] : memref<144x256xbf16, #tpu.memory_space<vmem>>, vector<16x128xbf16>
    tpu.vector_store %arg11[%c112_50, %c0_51], %68 {strides = array<i32>} : memref<144x256xbf16, #tpu.memory_space<vmem>>, vector<16x128xbf16>,
    %c0_52 = arith.constant 0 : index
    %c0_53 = arith.constant 0 : index
    %c34 = arith.constant 34 : index
    %70 = vector.load %arg10[%c0_52, %c0_53, %c34] : memref<2x16x162xbf16, #tpu.memory_space<vmem>>, vector<1x16x128xbf16>
    %71 = vector.shape_cast %70 : vector<1x16x128xbf16> to vector<16x128xbf16>
    %72 = arith.select %10, %71, %11 : vector<16x128xi1>, vector<16x128xbf16>
    %c128 = arith.constant 128 : index
    %c0_54 = arith.constant 0 : index
    %73 = vector.load %arg11[%c128, %c0_54] : memref<144x256xbf16, #tpu.memory_space<vmem>>, vector<16x128xbf16>
    tpu.vector_store %arg11[%c128, %c0_54], %72 {strides = array<i32>} : memref<144x256xbf16, #tpu.memory_space<vmem>>, vector<16x128xbf16>,
    %c1_55 = arith.constant 1 : index
    %c0_56 = arith.constant 0 : index
    %c0_57 = arith.constant 0 : index
    %74 = vector.load %arg3[%c1_55, %c0_56, %c0_57] : memref<2x4x128xf32, #tpu.memory_space<vmem>>, vector<1x4x128xf32>
    %75 = vector.shape_cast %74 : vector<1x4x128xf32> to vector<4x128xf32>
    %76 = arith.truncf %75 : vector<4x128xf32> to vector<4x128xbf16>
    %c1_58 = arith.constant 1 : index
    %c0_59 = arith.constant 0 : index
    %c17_60 = arith.constant 17 : index
    %77 = vector.load %arg10[%c1_58, %c0_59, %c17_60] : memref<2x16x162xbf16, #tpu.memory_space<vmem>>, vector<1x4x128xbf16>
    %78 = vector.shape_cast %77 : vector<1x4x128xbf16> to vector<4x128xbf16>
    %79 = vector.shape_cast %76 : vector<4x128xbf16> to vector<1x4x128xbf16>
    tpu.vector_store %arg10[%c1_58, %c0_59, %c17_60], %79 {strides = array<i32>} : memref<2x16x162xbf16, #tpu.memory_space<vmem>>, vector<1x4x128xbf16>,
    %c1_61 = arith.constant 1 : index
    %c0_62 = arith.constant 0 : index
    %c112_63 = arith.constant 112 : index
    %80 = vector.load %arg2[%c1_61, %c0_62, %c112_63] : memref<2x4x128xf32, #tpu.memory_space<vmem>>, vector<1x4x16xf32>
    %81 = vector.shape_cast %80 : vector<1x4x16xf32> to vector<4x16xf32>
    %82 = arith.truncf %81 : vector<4x16xf32> to vector<4x16xbf16>
    %c1_64 = arith.constant 1 : index
    %c0_65 = arith.constant 0 : index
    %c1_66 = arith.constant 1 : index
    %83 = vector.load %arg10[%c1_64, %c0_65, %c1_66] : memref<2x16x162xbf16, #tpu.memory_space<vmem>>, vector<1x4x16xbf16>
    %84 = vector.shape_cast %83 : vector<1x4x16xbf16> to vector<4x16xbf16>
    %85 = vector.shape_cast %82 : vector<4x16xbf16> to vector<1x4x16xbf16>
    tpu.vector_store %arg10[%c1_64, %c0_65, %c1_66], %85 {strides = array<i32>} : memref<2x16x162xbf16, #tpu.memory_space<vmem>>, vector<1x4x16xbf16>,
    %c1_67 = arith.constant 1 : index
    %c0_68 = arith.constant 0 : index
    %c0_69 = arith.constant 0 : index
    %86 = vector.load %arg4[%c1_67, %c0_68, %c0_69] : memref<2x4x128xf32, #tpu.memory_space<vmem>>, vector<1x4x16xf32>
    %87 = vector.shape_cast %86 : vector<1x4x16xf32> to vector<4x16xf32>
    %88 = arith.truncf %87 : vector<4x16xf32> to vector<4x16xbf16>
    %c1_70 = arith.constant 1 : index
    %c0_71 = arith.constant 0 : index
    %c145_72 = arith.constant 145 : index
    %89 = vector.load %arg10[%c1_70, %c0_71, %c145_72] : memref<2x16x162xbf16, #tpu.memory_space<vmem>>, vector<1x4x16xbf16>
    %90 = vector.shape_cast %89 : vector<1x4x16xbf16> to vector<4x16xbf16>
    %91 = vector.shape_cast %88 : vector<4x16xbf16> to vector<1x4x16xbf16>
    tpu.vector_store %arg10[%c1_70, %c0_71, %c145_72], %91 {strides = array<i32>} : memref<2x16x162xbf16, #tpu.memory_space<vmem>>, vector<1x4x16xbf16>,
    %c0_i32_73 = arith.constant 0 : i32
    %92 = arith.cmpi eq, %arg1, %c0_i32_73 : i32
    %93 = arith.extui %92 : i1 to i32
    %c0_i32_74 = arith.constant 0 : i32
    %94 = arith.cmpi ne, %93, %c0_i32_74 : i32
    scf.if %94 {
      %c1_158 = arith.constant 1 : index
      %c0_159 = arith.constant 0 : index
      %c1_160 = arith.constant 1 : index
      %194 = vector.load %arg10[%c1_158, %c0_159, %c1_160] : memref<2x16x162xbf16, #tpu.memory_space<vmem>>, vector<1x4x16xbf16>
      %195 = vector.shape_cast %194 : vector<1x4x16xbf16> to vector<4x16xbf16>
      %196 = vector.shape_cast %12 : vector<4x16xbf16> to vector<1x4x16xbf16>
      tpu.vector_store %arg10[%c1_158, %c0_159, %c1_160], %196 {strides = array<i32>} : memref<2x16x162xbf16, #tpu.memory_space<vmem>>, vector<1x4x16xbf16>,
    } else {
    }
    %c1_i32_75 = arith.constant 1 : i32
    %95 = arith.cmpi eq, %arg1, %c1_i32_75 : i32
    %96 = arith.extui %95 : i1 to i32
    %c0_i32_76 = arith.constant 0 : i32
    %97 = arith.cmpi ne, %96, %c0_i32_76 : i32
    scf.if %97 {
      %c1_158 = arith.constant 1 : index
      %c0_159 = arith.constant 0 : index
      %c145_160 = arith.constant 145 : index
      %194 = vector.load %arg10[%c1_158, %c0_159, %c145_160] : memref<2x16x162xbf16, #tpu.memory_space<vmem>>, vector<1x4x16xbf16>
      %195 = vector.shape_cast %194 : vector<1x4x16xbf16> to vector<4x16xbf16>
      %196 = vector.shape_cast %12 : vector<4x16xbf16> to vector<1x4x16xbf16>
      tpu.vector_store %arg10[%c1_158, %c0_159, %c145_160], %196 {strides = array<i32>} : memref<2x16x162xbf16, #tpu.memory_space<vmem>>, vector<1x4x16xbf16>,
    } else {
    }
    %cst_77 = arith.constant 0.000000e+00 : bf16
    %98 = vector.broadcast %cst_77 : bf16 to vector<12x162xbf16>
    %c1_78 = arith.constant 1 : index
    %c4_79 = arith.constant 4 : index
    %c0_80 = arith.constant 0 : index
    %99 = vector.load %arg10[%c1_78, %c4_79, %c0_80] : memref<2x16x162xbf16, #tpu.memory_space<vmem>>, vector<1x12x162xbf16>
    %100 = vector.shape_cast %99 : vector<1x12x162xbf16> to vector<12x162xbf16>
    %101 = vector.shape_cast %98 : vector<12x162xbf16> to vector<1x12x162xbf16>
    tpu.vector_store %arg10[%c1_78, %c4_79, %c0_80], %101 {strides = array<i32>} : memref<2x16x162xbf16, #tpu.memory_space<vmem>>, vector<1x12x162xbf16>,
    %c1_81 = arith.constant 1 : index
    %c0_82 = arith.constant 0 : index
    %c0_83 = arith.constant 0 : index
    %102 = vector.load %arg10[%c1_81, %c0_82, %c0_83] : memref<2x16x162xbf16, #tpu.memory_space<vmem>>, vector<1x16x128xbf16>
    %103 = vector.shape_cast %102 : vector<1x16x128xbf16> to vector<16x128xbf16>
    %104 = arith.select %6, %103, %11 : vector<16x128xi1>, vector<16x128xbf16>
    %c0_84 = arith.constant 0 : index
    %c128_85 = arith.constant 128 : index
    %105 = vector.load %arg11[%c0_84, %c128_85] : memref<144x256xbf16, #tpu.memory_space<vmem>>, vector<16x128xbf16>
    tpu.vector_store %arg11[%c0_84, %c128_85], %104 {strides = array<i32>} : memref<144x256xbf16, #tpu.memory_space<vmem>>, vector<16x128xbf16>,
    %c1_86 = arith.constant 1 : index
    %c0_87 = arith.constant 0 : index
    %c1_88 = arith.constant 1 : index
    %106 = vector.load %arg10[%c1_86, %c0_87, %c1_88] : memref<2x16x162xbf16, #tpu.memory_space<vmem>>, vector<1x16x128xbf16>
    %107 = vector.shape_cast %106 : vector<1x16x128xbf16> to vector<16x128xbf16>
    %c16_89 = arith.constant 16 : index
    %c128_90 = arith.constant 128 : index
    %108 = vector.load %arg11[%c16_89, %c128_90] : memref<144x256xbf16, #tpu.memory_space<vmem>>, vector<16x128xbf16>
    tpu.vector_store %arg11[%c16_89, %c128_90], %107 {strides = array<i32>} : memref<144x256xbf16, #tpu.memory_space<vmem>>, vector<16x128xbf16>,
    %c1_91 = arith.constant 1 : index
    %c0_92 = arith.constant 0 : index
    %c2_93 = arith.constant 2 : index
    %109 = vector.load %arg10[%c1_91, %c0_92, %c2_93] : memref<2x16x162xbf16, #tpu.memory_space<vmem>>, vector<1x16x128xbf16>
    %110 = vector.shape_cast %109 : vector<1x16x128xbf16> to vector<16x128xbf16>
    %111 = arith.select %10, %110, %11 : vector<16x128xi1>, vector<16x128xbf16>
    %c32_94 = arith.constant 32 : index
    %c128_95 = arith.constant 128 : index
    %112 = vector.load %arg11[%c32_94, %c128_95] : memref<144x256xbf16, #tpu.memory_space<vmem>>, vector<16x128xbf16>
    tpu.vector_store %arg11[%c32_94, %c128_95], %111 {strides = array<i32>} : memref<144x256xbf16, #tpu.memory_space<vmem>>, vector<16x128xbf16>,
    %c1_96 = arith.constant 1 : index
    %c0_97 = arith.constant 0 : index
    %c16_98 = arith.constant 16 : index
    %113 = vector.load %arg10[%c1_96, %c0_97, %c16_98] : memref<2x16x162xbf16, #tpu.memory_space<vmem>>, vector<1x16x128xbf16>
    %114 = vector.shape_cast %113 : vector<1x16x128xbf16> to vector<16x128xbf16>
    %115 = arith.select %6, %114, %11 : vector<16x128xi1>, vector<16x128xbf16>
    %c48_99 = arith.constant 48 : index
    %c128_100 = arith.constant 128 : index
    %116 = vector.load %arg11[%c48_99, %c128_100] : memref<144x256xbf16, #tpu.memory_space<vmem>>, vector<16x128xbf16>
    tpu.vector_store %arg11[%c48_99, %c128_100], %115 {strides = array<i32>} : memref<144x256xbf16, #tpu.memory_space<vmem>>, vector<16x128xbf16>,
    %c1_101 = arith.constant 1 : index
    %c0_102 = arith.constant 0 : index
    %c17_103 = arith.constant 17 : index
    %117 = vector.load %arg10[%c1_101, %c0_102, %c17_103] : memref<2x16x162xbf16, #tpu.memory_space<vmem>>, vector<1x16x128xbf16>
    %118 = vector.shape_cast %117 : vector<1x16x128xbf16> to vector<16x128xbf16>
    %c64_104 = arith.constant 64 : index
    %c128_105 = arith.constant 128 : index
    %119 = vector.load %arg11[%c64_104, %c128_105] : memref<144x256xbf16, #tpu.memory_space<vmem>>, vector<16x128xbf16>
    tpu.vector_store %arg11[%c64_104, %c128_105], %118 {strides = array<i32>} : memref<144x256xbf16, #tpu.memory_space<vmem>>, vector<16x128xbf16>,
    %c1_106 = arith.constant 1 : index
    %c0_107 = arith.constant 0 : index
    %c18_108 = arith.constant 18 : index
    %120 = vector.load %arg10[%c1_106, %c0_107, %c18_108] : memref<2x16x162xbf16, #tpu.memory_space<vmem>>, vector<1x16x128xbf16>
    %121 = vector.shape_cast %120 : vector<1x16x128xbf16> to vector<16x128xbf16>
    %122 = arith.select %10, %121, %11 : vector<16x128xi1>, vector<16x128xbf16>
    %c80_109 = arith.constant 80 : index
    %c128_110 = arith.constant 128 : index
    %123 = vector.load %arg11[%c80_109, %c128_110] : memref<144x256xbf16, #tpu.memory_space<vmem>>, vector<16x128xbf16>
    tpu.vector_store %arg11[%c80_109, %c128_110], %122 {strides = array<i32>} : memref<144x256xbf16, #tpu.memory_space<vmem>>, vector<16x128xbf16>,
    %c1_111 = arith.constant 1 : index
    %c0_112 = arith.constant 0 : index
    %c32_113 = arith.constant 32 : index
    %124 = vector.load %arg10[%c1_111, %c0_112, %c32_113] : memref<2x16x162xbf16, #tpu.memory_space<vmem>>, vector<1x16x128xbf16>
    %125 = vector.shape_cast %124 : vector<1x16x128xbf16> to vector<16x128xbf16>
    %126 = arith.select %6, %125, %11 : vector<16x128xi1>, vector<16x128xbf16>
    %c96_114 = arith.constant 96 : index
    %c128_115 = arith.constant 128 : index
    %127 = vector.load %arg11[%c96_114, %c128_115] : memref<144x256xbf16, #tpu.memory_space<vmem>>, vector<16x128xbf16>
    tpu.vector_store %arg11[%c96_114, %c128_115], %126 {strides = array<i32>} : memref<144x256xbf16, #tpu.memory_space<vmem>>, vector<16x128xbf16>,
    %c1_116 = arith.constant 1 : index
    %c0_117 = arith.constant 0 : index
    %c33_118 = arith.constant 33 : index
    %128 = vector.load %arg10[%c1_116, %c0_117, %c33_118] : memref<2x16x162xbf16, #tpu.memory_space<vmem>>, vector<1x16x128xbf16>
    %129 = vector.shape_cast %128 : vector<1x16x128xbf16> to vector<16x128xbf16>
    %c112_119 = arith.constant 112 : index
    %c128_120 = arith.constant 128 : index
    %130 = vector.load %arg11[%c112_119, %c128_120] : memref<144x256xbf16, #tpu.memory_space<vmem>>, vector<16x128xbf16>
    tpu.vector_store %arg11[%c112_119, %c128_120], %129 {strides = array<i32>} : memref<144x256xbf16, #tpu.memory_space<vmem>>, vector<16x128xbf16>,
    %c1_121 = arith.constant 1 : index
    %c0_122 = arith.constant 0 : index
    %c34_123 = arith.constant 34 : index
    %131 = vector.load %arg10[%c1_121, %c0_122, %c34_123] : memref<2x16x162xbf16, #tpu.memory_space<vmem>>, vector<1x16x128xbf16>
    %132 = vector.shape_cast %131 : vector<1x16x128xbf16> to vector<16x128xbf16>
    %133 = arith.select %10, %132, %11 : vector<16x128xi1>, vector<16x128xbf16>
    %c128_124 = arith.constant 128 : index
    %c128_125 = arith.constant 128 : index
    %134 = vector.load %arg11[%c128_124, %c128_125] : memref<144x256xbf16, #tpu.memory_space<vmem>>, vector<16x128xbf16>
    tpu.vector_store %arg11[%c128_124, %c128_125], %133 {strides = array<i32>} : memref<144x256xbf16, #tpu.memory_space<vmem>>, vector<16x128xbf16>,
    %c0_126 = arith.constant 0 : index
    %c0_127 = arith.constant 0 : index
    %135 = vector.load %arg5[%c0_126, %c0_127] : memref<8x144xbf16, #tpu.memory_space<vmem>>, vector<8x144xbf16>
    %c0_128 = arith.constant 0 : index
    %c0_129 = arith.constant 0 : index
    %136 = vector.load %arg11[%c0_128, %c0_129] : memref<144x256xbf16, #tpu.memory_space<vmem>>, vector<144x256xbf16>
    %cst_130 = arith.constant dense<0.000000e+00> : vector<8x256xf32>
    %137 = tpu.matmul %135, %136, %cst_130 {dimension_numbers = #tpu.dot_dimension_numbers<[1], [0], [0], [1], [0, 0, 1, 1], [], []>} : vector<8x144xbf16>, vector<144x256xbf16>, vector<8x256xf32> -> vector<8x256xf32>
    %c0_131 = arith.constant 0 : index
    %c0_132 = arith.constant 0 : index
    %138 = vector.load %arg6[%c0_131, %c0_132] : memref<8x1xf32, #tpu.memory_space<vmem>>, vector<8x1xf32>
    %139 = vector.broadcast %138 : vector<8x1xf32> to vector<8x256xf32>
    %140 = arith.addf %137, %139 : vector<8x256xf32>
    %cst_133 = arith.constant 5.000000e-01 : f32
    %141 = vector.broadcast %cst_133 : f32 to vector<8x256xf32>
    %142 = arith.mulf %141, %140 : vector<8x256xf32>
    %cst_134 = arith.constant 0.707106769 : f32
    %143 = vector.broadcast %cst_134 : f32 to vector<8x256xf32>
    %144 = arith.mulf %140, %143 : vector<8x256xf32>
    %145 = math.absf %144 : vector<8x256xf32>
    %cst_135 = arith.constant 0.327591091 : f32
    %146 = vector.broadcast %cst_135 : f32 to vector<8x256xf32>
    %147 = arith.mulf %146, %145 : vector<8x256xf32>
    %cst_136 = arith.constant 1.000000e+00 : f32
    %148 = vector.broadcast %cst_136 : f32 to vector<8x256xf32>
    %149 = arith.addf %148, %147 : vector<8x256xf32>
    %150 = tpu.reciprocal %149 {approx = true} : vector<8x256xf32> -> vector<8x256xf32>
    %cst_137 = arith.constant 1.06140542 : f32
    %151 = vector.broadcast %cst_137 : f32 to vector<8x256xf32>
    %152 = arith.mulf %151, %150 : vector<8x256xf32>
    %cst_138 = arith.constant -1.45315206 : f32
    %153 = vector.broadcast %cst_138 : f32 to vector<8x256xf32>
    %154 = arith.addf %152, %153 : vector<8x256xf32>
    %155 = arith.mulf %154, %150 : vector<8x256xf32>
    %cst_139 = arith.constant 1.42141378 : f32
    %156 = vector.broadcast %cst_139 : f32 to vector<8x256xf32>
    %157 = arith.addf %155, %156 : vector<8x256xf32>
    %158 = arith.mulf %157, %150 : vector<8x256xf32>
    %cst_140 = arith.constant -0.284496725 : f32
    %159 = vector.broadcast %cst_140 : f32 to vector<8x256xf32>
    %160 = arith.addf %158, %159 : vector<8x256xf32>
    %161 = arith.mulf %160, %150 : vector<8x256xf32>
    %cst_141 = arith.constant 0.254829586 : f32
    %162 = vector.broadcast %cst_141 : f32 to vector<8x256xf32>
    %163 = arith.addf %161, %162 : vector<8x256xf32>
    %164 = arith.mulf %163, %150 : vector<8x256xf32>
    %cst_142 = arith.constant 0.000000e+00 : f32
    %165 = vector.broadcast %cst_142 : f32 to vector<8x256xf32>
    %166 = arith.subf %165, %145 : vector<8x256xf32>
    %167 = arith.mulf %166, %145 : vector<8x256xf32>
    %168 = math.exp %167 : vector<8x256xf32>
    %169 = arith.mulf %164, %168 : vector<8x256xf32>
    %cst_143 = arith.constant 1.000000e+00 : f32
    %170 = vector.broadcast %cst_143 : f32 to vector<8x256xf32>
    %171 = arith.subf %170, %169 : vector<8x256xf32>
    %cst_144 = arith.constant 0.000000e+00 : f32
    %172 = vector.broadcast %cst_144 : f32 to vector<8x256xf32>
    %173 = arith.cmpf olt, %144, %172 : vector<8x256xf32>
    %cst_145 = arith.constant 0.000000e+00 : f32
    %174 = vector.broadcast %cst_145 : f32 to vector<8x256xf32>
    %175 = arith.subf %174, %171 : vector<8x256xf32>
    %176 = arith.select %173, %175, %171 : vector<8x256xi1>, vector<8x256xf32>
    %cst_146 = arith.constant 1.000000e+00 : f32
    %177 = vector.broadcast %cst_146 : f32 to vector<8x256xf32>
    %178 = arith.addf %177, %176 : vector<8x256xf32>
    %179 = arith.mulf %142, %178 : vector<8x256xf32>
    %c0_147 = arith.constant 0 : index
    %c0_148 = arith.constant 0 : index
    %180 = vector.load %arg7[%c0_147, %c0_148] : memref<4x8xbf16, #tpu.memory_space<vmem>>, vector<4x8xbf16>
    %181 = arith.truncf %179 : vector<8x256xf32> to vector<8x256xbf16>
    %cst_149 = arith.constant dense<0.000000e+00> : vector<4x256xf32>
    %182 = tpu.matmul %180, %181, %cst_149 {dimension_numbers = #tpu.dot_dimension_numbers<[1], [0], [0], [1], [0, 0, 1, 1], [], []>} : vector<4x8xbf16>, vector<8x256xbf16>, vector<4x256xf32> -> vector<4x256xf32>
    %c0_150 = arith.constant 0 : index
    %c0_151 = arith.constant 0 : index
    %183 = vector.load %arg8[%c0_150, %c0_151] : memref<4x1xf32, #tpu.memory_space<vmem>>, vector<4x1xf32>
    %184 = vector.broadcast %183 : vector<4x1xf32> to vector<4x256xf32>
    %185 = arith.addf %182, %184 : vector<4x256xf32>
    %186 = vector.extract_strided_slice %185 {offsets = [0, 0], sizes = [4, 128], strides = [1, 1]} : vector<4x256xf32> to vector<4x128xf32>
    %c0_152 = arith.constant 0 : index
    %c0_153 = arith.constant 0 : index
    %c0_154 = arith.constant 0 : index
    %187 = vector.load %arg9[%c0_152, %c0_153, %c0_154] : memref<2x4x128xf32, #tpu.memory_space<vmem>>, vector<1x4x128xf32>
    %188 = vector.shape_cast %187 : vector<1x4x128xf32> to vector<4x128xf32>
    %189 = vector.shape_cast %186 : vector<4x128xf32> to vector<1x4x128xf32>
    tpu.vector_store %arg9[%c0_152, %c0_153, %c0_154], %189 {strides = array<i32>} : memref<2x4x128xf32, #tpu.memory_space<vmem>>, vector<1x4x128xf32>,
    %190 = vector.extract_strided_slice %185 {offsets = [0, 128], sizes = [4, 128], strides = [1, 1]} : vector<4x256xf32> to vector<4x128xf32>
    %c1_155 = arith.constant 1 : index
    %c0_156 = arith.constant 0 : index
    %c0_157 = arith.constant 0 : index
    %191 = vector.load %arg9[%c1_155, %c0_156, %c0_157] : memref<2x4x128xf32, #tpu.memory_space<vmem>>, vector<1x4x128xf32>
    %192 = vector.shape_cast %191 : vector<1x4x128xf32> to vector<4x128xf32>
    %193 = vector.shape_cast %190 : vector<4x128xf32> to vector<1x4x128xf32>
    tpu.vector_store %arg9[%c1_155, %c0_156, %c0_157], %193 {strides = array<i32>} : memref<2x4x128xf32, #tpu.memory_space<vmem>>, vector<1x4x128xf32>,
    return
  }
  func.func @transform_0(%arg0: i32, %arg1: i32) -> (i32, i32, i32) {
    %c1_i32 = arith.constant 1 : i32
    %0 = arith.subi %arg1, %c1_i32 : i32
    %c0_i32 = arith.constant 0 : i32
    %1 = arith.maxsi %0, %c0_i32 : i32
    %c0_i32_0 = arith.constant 0 : i32
    %c0_i32_1 = arith.constant 0 : i32
    return %arg0, %c0_i32_0, %1 : i32, i32, i32
  }
  func.func @transform_1(%arg0: i32, %arg1: i32) -> (i32, i32, i32) {
    %c0_i32 = arith.constant 0 : i32
    %c0_i32_0 = arith.constant 0 : i32
    return %arg0, %c0_i32, %arg1 : i32, i32, i32
  }
  func.func @transform_2(%arg0: i32, %arg1: i32) -> (i32, i32, i32) {
    %c1_i32 = arith.constant 1 : i32
    %0 = arith.addi %arg1, %c1_i32 : i32
    %c1_i32_0 = arith.constant 1 : i32
    %1 = arith.minsi %0, %c1_i32_0 : i32
    %c0_i32 = arith.constant 0 : i32
    %c0_i32_1 = arith.constant 0 : i32
    return %arg0, %c0_i32, %1 : i32, i32, i32
  }
  func.func @transform_3(%arg0: i32, %arg1: i32) -> (i32, i32) {
    %c0_i32 = arith.constant 0 : i32
    %c0_i32_0 = arith.constant 0 : i32
    %c0_i32_1 = arith.constant 0 : i32
    return %c0_i32, %c0_i32_0 : i32, i32
  }
  func.func @transform_4(%arg0: i32, %arg1: i32) -> (i32, i32) {
    %c0_i32 = arith.constant 0 : i32
    %c0_i32_0 = arith.constant 0 : i32
    %c0_i32_1 = arith.constant 0 : i32
    return %c0_i32, %c0_i32_0 : i32, i32
  }
  func.func @transform_5(%arg0: i32, %arg1: i32) -> (i32, i32) {
    %c0_i32 = arith.constant 0 : i32
    %c0_i32_0 = arith.constant 0 : i32
    %c0_i32_1 = arith.constant 0 : i32
    return %c0_i32, %c0_i32_0 : i32, i32
  }
  func.func @transform_6(%arg0: i32, %arg1: i32) -> (i32, i32) {
    %c0_i32 = arith.constant 0 : i32
    %c0_i32_0 = arith.constant 0 : i32
    %c0_i32_1 = arith.constant 0 : i32
    return %c0_i32, %c0_i32_0 : i32, i32
  }
  func.func @transform_7(%arg0: i32, %arg1: i32) -> (i32, i32, i32) {
    %c0_i32 = arith.constant 0 : i32
    %c0_i32_0 = arith.constant 0 : i32
    return %arg0, %c0_i32, %arg1 : i32, i32, i32
  }
}

</mosaic_0001>

<bundles_post_ra>
// kernel: cc_forward.1
= control target key start
LH: loop header
LB: loop body
LE: loop exit
PB: predicated region body
PF: predicated region fallthrough
CT: control target
= control target key end

     0   :  { %s1763_s24 = smov 0   ;;  %s1765_s25 = smov 0   ;;  %s2174_s0 = inlined_call_operand.vmem [shape: f32[2,4,256], index: 0, kind: input, shape index: {}, may-alias: {0,1,2}]   ;;  %s2175_s1 = inlined_call_operand.vmem [shape: f32[2,4,256], index: 1, kind: input, shape index: {}, may-alias: {0,1,2}]   ;;  %s2176_s2 = inlined_call_operand.vmem [shape: f32[2,4,256], index: 2, kind: input, shape index: {}, may-alias: {0,1,2}]   ;;  %s2177_s3 = inlined_call_operand.vmem [shape: bf16[8,144], index: 3, kind: input, shape index: {}]   ;;  %s2178_s4 = inlined_call_operand.vmem [shape: f32[8,1], index: 4, kind: input, shape index: {}]   ;;  %s2179_s5 = inlined_call_operand.vmem [shape: bf16[4,8], index: 5, kind: input, shape index: {}]   ;;  %s2180_s6 = inlined_call_operand.vmem [shape: f32[4,1], index: 6, kind: input, shape index: {}]   ;;  %s2181_s7 = inlined_call_operand.vmem [shape: f32[2,4,256], index: 7, kind: output, shape index: {}]  }
   0x1   :  { %s1767_s26 = smov 0   ;;  %s1769_s27 = smov 0  }
   0x2   :  { %s1771_s28 = smov 0   ;;  %s1773_s29 = smov 0  }
   0x3   :  { %s1775_s30 = smov 0  }
   0x4 LB: > { %s1410_s8 = sadd.s32 4294967295, %s1702_s30   ;;  %s26_s9 = sadd.s32 1, %s1698_s29  ;;  %s1702_s30 = sphi %s1775_s30, %s17_s30   ;;  %s1698_s29 = sphi %s1773_s29, %s2221_s29   ;;  %s1694_s28 = sphi %s1771_s28, %s2220_s28   ;;  %s1690_s27 = sphi %s1769_s27, %s2164_s27   ;;  %s1686_s26 = sphi %s1767_s26, %s2219_s26   ;;  %s1682_s25 = sphi %s1765_s25, %s2218_s25   ;;  %s1678_s24 = sphi %s1763_s24, %s2156_s24  }
   0x5   : > { %p27_p0 = scmp.ge.s32.totalorder %s26_s9, 2  ;;  %p1674_p1 = scmp.ne.s32.totalorder %s1690_s27, 0 }
   0x6   : > { %p52_p2 = scmp.eq.s32.totalorder %s1702_s30, 0  ;;  %s72_s11 = sadd.s32 1, %s1686_s26 }
   0x7   : > { %s2223_s9 = smov (%p27_p0, %s26_s9), 0  ;;  %p79_p5 = scmp.ne.s32.totalorder %s1686_s26, %s1682_s25 }
   0x8   : > { %s68_s10 = ssub.s32 %s1698_s29, %s2223_s9  ;;  %p53_p3 = por %p1674_p1, %p52_p2 }
   0x9   : > { %p70_p4 = scmp.eq.s32.totalorder %s68_s10, 0  ;;  %p81_p6 = por %p79_p5, %p52_p2 }
   0xa   : > { %p1675_p7 = scmp.ne.s32.totalorder %s1678_s24, 0  ;;  %p229_p8 = scmp.eq.s32.totalorder %s1410_s8, 1 }
   0xb   : > { %s1810_s12 = scalar_select %p70_p4, %s1686_s26, %s72_s11  }
   0xc   : > { %p1813_p9 = por %p1675_p7, %p52_p2  ;;  %p1817_p10 = por %p229_p8, %p79_p5 }
   0xd   : > { %p1415_p11 = scmp.ge.s32.totalorder %s1702_s30, 2 }
   0xf   : > { %263 = sbr.rel (%p1415_p11) target bundleno = 36 (0x24), region = 32 }
  0x14   : > { %266 = sbr.rel (!%p53_p3) target bundleno = 25 (0x19), region = 36  ;;  %v295_v0 = vld [vmem:[%s2174_s0] sm:$0xf] (%p53_p3)  ;;  %v297_v1 = vld [vmem:[%s2174_s0 + $0x8] sm:$0xf] (%p53_p3) }
  0x15   : > { %296 = vst [vmem:[#allocation4] sm:$0xf] (%p53_p3), %v295_v0 }
  0x16   : > { %298 = vst [vmem:[#allocation4 + $0x4] sm:$0xf] (%p53_p3), %v297_v1 }
  0x19 PF: > { %326 = sbr.rel (!%p81_p6) target bundleno = 31 (0x1f), region = 77  ;;  %s328_s19 = sand.u32 (%p81_p6), 1, %s1686_s26  }
  0x1a   : > { %s1420_s20 = sshll.u32 (%p81_p6), %s1698_s29, 2  ;;  %s1419_s21 = sshll.u32 (%p81_p6), %s328_s19, 3 }
  0x1b   : > { %s335_s8 = scalar_lea.vmem (%p81_p6), %s2175_s1, %s1420_s20  ;;  %s330_s10 = scalar_lea.vmem (%p81_p6), [#allocation5], %s1419_s21 }
  0x1c   : > { %v352_v2 = vld [vmem:[%s335_s8] sm:$0xf] (%p81_p6)  ;;  %v354_v3 = vld [vmem:[%s335_s8 + $0x8] sm:$0xf] (%p81_p6) }
  0x1d   : > { %353 = vst [vmem:[%s330_s10] sm:$0xf] (%p81_p6), %v352_v2 }
  0x1e   : > { %355 = vst [vmem:[%s330_s10 + $0x4] sm:$0xf] %v354_v3 }
  0x1f PF: > { %383 = sbr.rel (!%p1813_p9) target bundleno = 36 (0x24), region = 118  ;;  %v1672_v4 = vld [vmem:[%s2176_s2 + $0x4] sm:$0xf] (%p1813_p9)  ;;  %v1673_v5 = vld [vmem:[%s2176_s2 + $0xc] sm:$0xf] (%p1813_p9) }
  0x20   : > { %413 = vst [vmem:[#allocation6] sm:$0xf] (%p1813_p9), %v1672_v4 }
  0x21   : > { %415 = vst [vmem:[#allocation6 + $0x4] sm:$0xf] (%p1813_p9), %v1673_v5 }
  0x24 PF: > { %p1423_p12 = scmp.ge.s32.totalorder %s1702_s30, 1  ;;  %p442_p13 = scmp.lt.s32.totalorder %s1702_s30, 3 }
  0x26   : > { %p443_p0 = pnand %p1423_p12, %p442_p13 }
  0x27   : > { %s456_s13 = sand.u32 (!%p443_p0), 1, %s1682_s25   ;;  %s463_s19 = sand.u32 (!%p443_p0), 1, %s1678_s24  }
  0x28   : > { %446 = sbr.rel (%p443_p0) target bundleno = 966 (0x3c6), region = 159  ;;  %s1844_s18 = sshll.u32 (!%p443_p0), %s456_s13, 3 }
  0x29   : > { %s458_s20 = scalar_lea.vmem (!%p443_p0), [#allocation5], %s1844_s18  ;;  %s1850_s21 = sshll.u32 (!%p443_p0), %s463_s19, 3 }
  0x2a   : > { %s449_s22 = sand.u32 (!%p443_p0), 1, %s1690_s27   ;;  %s465_s8 = scalar_lea.vmem (!%p443_p0), [#allocation6], %s1850_s21 }
  0x2b   : > { %s1853_s23 = sshll.u32 (!%p443_p0), %s449_s22, 3  ;;  %s1704_s25 = smov (!%p443_p0), 17  }
  0x2c   : > { %s451_s24 = scalar_lea.vmem (!%p443_p0), [#allocation4], %s1853_s23  ;;  %s1882_s27 = scalar_lea.vmem (!%p443_p0), [#allocation7], %s1844_s18 }
  0x2d   : > { %v523_v6 = vld [vmem:[%s458_s20] sm:$0xf]  ;;  %v544_v8 = vld [vmem:[%s465_s8] sm:$0xf]  ;;  %v514_v12 = vlaneseq  ;;  %vm532_vm2 = vcmask 1041544   ;;  %vm533_vm3 = vcmask 136196  }
  0x2e   : > { %v524_v7 = vpack.c.bf16 %v523_v6, %v523_v6  ;;  %v545_v9 = vpack.c.bf16 %v544_v8, %v544_v8  ;;  %v536_v10 = vld [vmem:[%s451_s24] sm:$0xf]  ;;  %vm529_vm4 = vcmask 138240   ;;  %vm1872_vm5 = vmor %vm533_vm3, %vm532_vm2  ;;  %vm550_vm6 = vcmask 263304   ;;  %p1428_p1 = scmp.ne.s32.totalorder %s1694_s28, 0 }
  0x2f   : > { %v537_v11 = vpack.c.bf16 %v536_v10, %v536_v10  ;;  %v515_v13 = vand.u32 127, %v514_v12  ;;  %vm542_vm7 = vcmask 132104  }
  0x30   : > { %526 = vrot.lane.b32.xlu0 %v524_v7, %s1704_s25  ;;  %547 = vrot.lane.b32.xlu1 %v545_v9, %s1704_s25 }
  0x31   : > { %v516_v14 = vand.u32 15, %v515_v13 }
  0x33   : > { %vm1864_vm0 = vcmp.ne.s32.totalorder %v516_v14, 0  ;;  %vm1868_vm1 = vcmp.ne.s32.totalorder %v516_v14, 15 }
  0x38   : > { %539 = vrot.lane.b32.xlu0 %v537_v11, %s1704_s25 }
  0xa2   : > { %v527_v17 = vpop.permute.xlu0 %526  ;;  %v548_v20 = vpop.permute.xlu1 %547 }
  0xa3   : > { %v528_v19 = vrot.slane %v527_v17, 4 }
  0xa5   : > { %v530_v21 = vsel %vm529_vm4, %v528_v19, %v527_v17 }
  0xa6   : > { %535 = vst.msk [vmem:[#allocation2] sm:$0x33] %vm1872_vm5, %v530_v21 }
  0xa7   : > { %551 = vst.msk [vmem:[#allocation2 + $0x4] sm:$0x3] %vm550_vm6, %v548_v20  ;;  %555 = sbr.rel (%p1428_p1) target bundleno = 174 (0xae), region = 175 }
  0xaa   : > { %v540_v22 = vpop.permute.xlu0 %539 }
  0xab   : > { %543 = vst.msk [vmem:[#allocation2] sm:$0x3] %vm542_vm7, %v540_v22 }
  0xac   : > { %v1705_v23 = vmov 0  }
  0xad   : > { %556 = vst.msk [vmem:[#allocation2] sm:$0x3] %vm542_vm7, %v1705_v23 }
  0xae PF: > { %p1429_p2 = scmp.ne.s32.totalorder %s1694_s28, 1 }
  0xb0   : > { %560 = sbr.rel (%p1429_p2) target bundleno = 183 (0xb7), region = 179 }
  0xb5   : > { %v1706_v24 = vmov 0  }
  0xb6   : > { %561 = vst.msk [vmem:[#allocation2 + $0x4] sm:$0x3] %vm550_vm6, %v1706_v24 }
  0xb7 PF: > { %vm2182_vm8 = vcmask 1043456   ;;  %vm567_vm9 = vcmask 277508   ;;  %vm596_vm10 = vmpackc.low %vm1868_vm1, %vm1868_vm1  ;;  %vm562_vm11 = vcmask 1043458   ;;  %v1707_v26 = vmov 0   ;;  %s1708_s10 = smov 2   ;;  %s1709_s11 = smov 18  }
  0xb8   : > { %vm1896_vm12 = vmor %vm567_vm9, %vm2182_vm8  ;;  %v597_v27 = vsel %vm596_vm10, 65537, %v1707_v26  ;;  %vm563_vm13 = vcmask 277510   ;;  %s1710_s15 = smov 34   ;;  %s1711_s16 = smov 16   ;;  %v1430_v36 = vld [vmem:[%s458_s20 + $0x4] sm:$0xf]  ;;  %v1945_v42 = vunpack.c.l.b16 %v1707_v26  ;;  %v1948_v43 = vunpack.c.h.b16 %v1707_v26 }
  0xb9   : > { %598 = vrot.lane.b32.xlu0 %v597_v27, %s1708_s10  ;;  %vm1901_vm14 = vmor %vm563_vm13, %vm562_vm11  ;;  %569 = vst.msk [vmem:[#allocation2 + $0x8] sm:$0xff] %vm1896_vm12, %v1707_v26  ;;  %678 = vrot.lane.b32.xlu1 %v597_v27, %s1709_s11  ;;  %s1712_s17 = smov 32   ;;  %s1713_s13 = smov 127   ;;  %v788_v37 = vpack.c.bf16 %v1430_v36, %v1430_v36  ;;  %vm681_vm3 = vcmask 146432   ;;  %vm633_vm10 = vcmask 130048   ;;  %vm712_vm11 = vcmask 261120  }
  0xba   : > { %565 = vst.msk [vmem:[#allocation2] sm:$0xcc] %vm1901_vm14, %v1707_v26  ;;  %757 = vrot.lane.b32.xlu2 %v597_v27, %s1710_s15  ;;  %vm1914_vm15 = vmpackc.low %vm1864_vm0, %vm1864_vm0  ;;  %s1714_s19 = smov 111   ;;  %s1715_s18 = smov 95   ;;  %vm601_vm0 = vcmask 15360  }
  0xbb   : > { %v629_v30 = vsel %vm1914_vm15, 65537, %v1707_v26  ;;  %s1716_s20 = smov 126   ;;  %s1717_s22 = smov 112   ;;  %v1431_v10 = vld [vmem:[%s451_s24 + $0x4] sm:$0xf] }
  0xbc   : > { %s1718_s10 = smov 96   ;;  %v799_v15 = vpack.c.bf16 %v1431_v10, %v1431_v10  ;;  %s1719_s23 = smov 110   ;;  %v1432_v23 = vld [vmem:[%s465_s8 + $0x4] sm:$0xf] }
  0xbd   : > { %s1720_s24 = smov 94   ;;  %v807_v24 = vpack.c.bf16 %v1432_v23, %v1432_v23 }
  0xc0   : > { %v571_v31 = vld [vmem:[#allocation2 + $0x8] sm:$0xf] }
  0xc1   : > { %630 = vrot.lane.b32.xlu0 %v629_v30, %s1711_s16  ;;  %v570_v32 = vld [vmem:[#allocation2] sm:$0xf]  ;;  %v574_v33 = vsel %vm1914_vm15, %v571_v31, 0  ;;  %709 = vrot.lane.b32.xlu1 %v629_v30, %s1712_s17  ;;  %v1931_v38 = vld [vmem:[#allocation2 + $0x8] sm:$0xff] }
  0xc2   : > { %v1923_v34 = vld [vmem:[#allocation2] sm:$0xff]  ;;  %v573_v35 = vsel %vm1914_vm15, %v570_v32, 0  ;;  %576 = vst [vmem:[#allocation3 + $0x8] sm:$0xf] %v574_v33 }
  0xc3   : > { %581 = vrot.lane.b32.xlu2 %v1923_v34, %s1713_s13  ;;  %575 = vst [vmem:[#allocation3] sm:$0xf] %v573_v35 }
  0xc9   : > { %790 = vrot.lane.b32.xlu1 %v788_v37, %s1704_s25  ;;  %583 = vrot.lane.b32.xlu0 %v1931_v38, %s1713_s13 }
  0xd1   : > { %665 = vrot.lane.b32.xlu1 %v1931_v38, %s1714_s19  ;;  %663 = vrot.lane.b32.xlu0 %v1923_v34, %s1714_s19 }
  0xd9   : > { %744 = vrot.lane.b32.xlu1 %v1931_v38, %s1715_s18  ;;  %742 = vrot.lane.b32.xlu0 %v1923_v34, %s1715_s18 }
 0x114   : > { %v758_v55 = vpop.permute.xlu2 %757 }
 0x115   : > { %v759_v2 = vrot.slane %v758_v55, 4 }
 0x11d   : > { %v582_v7 = vpop.permute.xlu2 %581 }
 0x11e   : > { %v585_v8 = vrot.slane %v582_v7, 4 }
 0x12b   : > { %v599_v39 = vpop.permute.xlu0 %598  ;;  %v679_v40 = vpop.permute.xlu1 %678 }
 0x12c   : > { %v600_v41 = vrot.slane %v599_v39, 4  ;;  %v680_v47 = vrot.slane %v679_v40, 4 }
 0x12e   : > { %v602_v44 = vsel %vm601_vm0, %v600_v41, %v599_v39  ;;  %v682_v56 = vsel %vm681_vm3, %v680_v47, %v679_v40  ;;  %vm760_vm3 = vcmask 277504  }
 0x12f   : > { %v603_v45 = vunpack.c.l.b16 %v602_v44  ;;  %v604_v46 = vunpack.c.h.b16 %v602_v44  ;;  %v683_v63 = vunpack.c.l.b16 %v682_v56  ;;  %v684_v0 = vunpack.c.h.b16 %v682_v56 }
 0x130   : > { %v761_v9 = vsel %vm760_vm3, %v759_v2, %v758_v55 }
 0x131   : > { %vm607_vm1 = vcmp.ne.s32.totalorder %v603_v45, %v1945_v42  ;;  %vm608_vm2 = vcmp.ne.s32.totalorder %v604_v46, %v1948_v43  ;;  %v762_v13 = vunpack.c.l.b16 %v761_v9  ;;  %v763_v14 = vunpack.c.h.b16 %v761_v9 }
 0x132   : > { %vm1952_vm9 = vmpackc.low %vm608_vm2, %vm607_vm1 }
 0x133   : > { %v631_v49 = vpop.permute.xlu0 %630  ;;  %v610_v50 = vsel %vm1952_vm9, %v1923_v34, 0  ;;  %v611_v51 = vsel %vm1952_vm9, %v1931_v38, 0  ;;  %v710_v52 = vpop.permute.xlu1 %709  ;;  %vm766_vm3 = vcmp.ne.s32.totalorder %v762_v13, %v1945_v42 }
 0x134   : > { %v632_v53 = vrot.slane %v631_v49, 4  ;;  %614 = vrot.lane.b32.xlu1 %v610_v50, %s1716_s20  ;;  %616 = vrot.lane.b32.xlu2 %v611_v51, %s1716_s20  ;;  %v711_v54 = vrot.slane %v710_v52, 4 }
 0x136   : > { %v634_v57 = vsel %vm633_vm10, %v632_v53, %v631_v49  ;;  %v713_v58 = vsel %vm712_vm11, %v711_v54, %v710_v52 }
 0x137   : > { %v635_v59 = vunpack.c.l.b16 %v634_v57  ;;  %v636_v60 = vunpack.c.h.b16 %v634_v57  ;;  %v714_v61 = vunpack.c.l.b16 %v713_v58  ;;  %v715_v62 = vunpack.c.h.b16 %v713_v58 }
 0x139   : > { %vm639_vm13 = vcmp.ne.s32.totalorder %v635_v59, %v1945_v42  ;;  %vm640_vm0 = vcmp.ne.s32.totalorder %v636_v60, %v1948_v43  ;;  %vm718_vm1 = vcmp.ne.s32.totalorder %v714_v61, %v1945_v42  ;;  %vm719_vm2 = vcmp.ne.s32.totalorder %v715_v62, %v1948_v43 }
 0x13a   : > { %vm1969_vm8 = vmpackc.low %vm640_vm0, %vm639_vm13  ;;  %vm2183_vm13 = vcmask 1039360   ;;  %vm687_vm0 = vcmp.ne.s32.totalorder %v683_v63, %v1945_v42 }
 0x13b   : > { %v642_v3 = vsel %vm1969_vm8, %v1923_v34, 0  ;;  %v643_v4 = vsel %vm1969_vm8, %v1931_v38, 0  ;;  %vm1979_vm11 = vmpackc.low %vm719_vm2, %vm718_vm1  ;;  %vm688_vm1 = vcmp.ne.s32.totalorder %v684_v0, %v1948_v43  ;;  %v588_v11 = vsel %vm2183_vm13, %v582_v7, %v585_v8  ;;  %v791_v27 = vpop.permute.xlu1 %790  ;;  %v584_v30 = vpop.permute.xlu0 %583 }
 0x13c   : > { %646 = vrot.lane.b32.xlu0 %v642_v3, %s1717_s22  ;;  %648 = vrot.lane.b32.xlu2 %v643_v4, %s1717_s22  ;;  %v721_v6 = vsel %vm1979_vm11, %v1923_v34, 0  ;;  %vm1994_vm2 = vmpackc.low %vm688_vm1, %vm687_vm0  ;;  %592 = vst [vmem:[#allocation3 + $0x10] sm:$0xf] %v588_v11  ;;  %vm767_vm0 = vcmp.ne.s32.totalorder %v763_v14, %v1948_v43  ;;  %v722_v21 = vsel %vm1979_vm11, %v1931_v38, 0  ;;  %v586_v32 = vrot.slane %v584_v30, 4 }
 0x13d   : > { %725 = vrot.lane.b32.xlu1 %v721_v6, %s1718_s10  ;;  %v691_v16 = vsel %vm1994_vm2, %v1931_v38, 0  ;;  %v690_v17 = vsel %vm1994_vm2, %v1923_v34, 0  ;;  %vm2009_vm1 = vmpackc.low %vm767_vm0, %vm766_vm3  ;;  %vm2184_vm3 = vcmask 908288   ;;  %v792_v37 = vrot.slane %v791_v27, 4 }
 0x13e   : > { %v770_v20 = vsel %vm2009_vm1, %v1931_v38, 0  ;;  %v769_v22 = vsel %vm2009_vm1, %v1923_v34, 0  ;;  %v589_v35 = vsel %vm2183_vm13, %v584_v30, %v586_v32  ;;  %vm2185_vm0 = vcmask 777216  }
 0x13f   : > { %593 = vst [vmem:[#allocation3 + $0x18] sm:$0xf] %v589_v35  ;;  %v793_v41 = vsel %vm529_vm4, %v792_v37, %v791_v27  ;;  %vm620_vm13 = vcmask 1031168   ;;  %vm652_vm4 = vcmask 916480  }
 0x140   : > { %796 = vst.msk [vmem:[#allocation2 + $0x10] sm:$0x33] %vm1872_vm5, %v793_v41  ;;  %vm700_vm5 = vcmask 900096  }
 0x143   : > { %v666_v31 = vpop.permute.xlu1 %665  ;;  %v664_v34 = vpop.permute.xlu0 %663 }
 0x144   : > { %696 = vrot.lane.b32.xlu0 %v691_v16, %s1719_s23  ;;  %694 = vrot.lane.b32.xlu2 %v690_v17, %s1719_s23  ;;  %v668_v33 = vrot.slane %v666_v31, 4  ;;  %v667_v39 = vrot.slane %v664_v34, 4 }
 0x145   : > { %801 = vrot.lane.b32.xlu1 %v799_v15, %s1704_s25 }
 0x146   : > { %v671_v36 = vsel %vm2184_vm3, %v666_v31, %v668_v33  ;;  %v670_v42 = vsel %vm2184_vm3, %v664_v34, %v667_v39  ;;  %vm731_vm3 = vcmask 785408  }
 0x147   : > { %675 = vst [vmem:[#allocation3 + $0x48] sm:$0xf] %v671_v36 }
 0x148   : > { %674 = vst [vmem:[#allocation3 + $0x40] sm:$0xf] %v670_v42 }
 0x14b   : > { %v745_v38 = vpop.permute.xlu1 %744  ;;  %v743_v44 = vpop.permute.xlu0 %742 }
 0x14c   : > { %775 = vrot.lane.b32.xlu0 %v770_v20, %s1720_s24  ;;  %727 = vrot.lane.b32.xlu2 %v722_v21, %s1718_s10  ;;  %v747_v40 = vrot.slane %v745_v38, 4  ;;  %v746_v45 = vrot.slane %v743_v44, 4 }
 0x14e   : > { %v750_v43 = vsel %vm2185_vm0, %v745_v38, %v747_v40  ;;  %v749_v46 = vsel %vm2185_vm0, %v743_v44, %v746_v45  ;;  %vm779_vm0 = vcmask 769024  }
 0x14f   : > { %754 = vst [vmem:[#allocation3 + $0x78] sm:$0xf] %v750_v43 }
 0x150   : > { %753 = vst [vmem:[#allocation3 + $0x70] sm:$0xf] %v749_v46 }
 0x154   : > { %773 = vrot.lane.b32.xlu2 %v769_v22, %s1720_s24 }
 0x15c   : > { %809 = vrot.lane.b32.xlu2 %v807_v24, %s1704_s25 }
 0x18e   : > { %v617_v47 = vpop.permute.xlu2 %616 }
 0x18f   : > { %v619_v49 = vrot.slane %v617_v47, 4 }
 0x191   : > { %v622_v50 = vsel %vm620_vm13, %v617_v47, %v619_v49 }
 0x192   : > { %626 = vst [vmem:[#allocation3 + $0x28] sm:$0xf] %v622_v50 }
 0x196   : > { %v649_v18 = vpop.permute.xlu2 %648 }
 0x197   : > { %v651_v51 = vrot.slane %v649_v18, 4 }
 0x199   : > { %v654_v52 = vsel %vm652_vm4, %v649_v18, %v651_v51 }
 0x19a   : > { %658 = vst [vmem:[#allocation3 + $0x38] sm:$0xf] %v654_v52 }
 0x19e   : > { %v695_v53 = vpop.permute.xlu2 %694 }
 0x19f   : > { %v698_v54 = vrot.slane %v695_v53, 4 }
 0x1a1   : > { %v701_v55 = vsel %vm700_vm5, %v695_v53, %v698_v54 }
 0x1a2   : > { %705 = vst [vmem:[#allocation3 + $0x50] sm:$0xf] %v701_v55 }
 0x1a6   : > { %v615_v56 = vpop.permute.xlu1 %614  ;;  %v728_v57 = vpop.permute.xlu2 %727 }
 0x1a7   : > { %v618_v58 = vrot.slane %v615_v56, 4  ;;  %v730_v59 = vrot.slane %v728_v57, 4 }
 0x1a9   : > { %v621_v60 = vsel %vm620_vm13, %v615_v56, %v618_v58  ;;  %v733_v61 = vsel %vm731_vm3, %v728_v57, %v730_v59 }
 0x1aa   : > { %625 = vst [vmem:[#allocation3 + $0x20] sm:$0xf] %v621_v60 }
 0x1ab   : > { %737 = vst [vmem:[#allocation3 + $0x68] sm:$0xf] %v733_v61 }
 0x1ae   : > { %v647_v62 = vpop.permute.xlu0 %646  ;;  %v774_v63 = vpop.permute.xlu2 %773 }
 0x1af   : > { %v650_v0 = vrot.slane %v647_v62, 4  ;;  %v777_v2 = vrot.slane %v774_v63, 4  ;;  %v726_v3 = vpop.permute.xlu1 %725 }
 0x1b0   : > { %v729_v4 = vrot.slane %v726_v3, 4 }
 0x1b1   : > { %v653_v6 = vsel %vm652_vm4, %v647_v62, %v650_v0  ;;  %v780_v7 = vsel %vm779_vm0, %v774_v63, %v777_v2 }
 0x1b2   : > { %657 = vst [vmem:[#allocation3 + $0x30] sm:$0xf] %v653_v6  ;;  %v732_v8 = vsel %vm731_vm3, %v726_v3, %v729_v4 }
 0x1b3   : > { %784 = vst [vmem:[#allocation3 + $0x80] sm:$0xf] %v780_v7 }
 0x1b4   : > { %736 = vst [vmem:[#allocation3 + $0x60] sm:$0xf] %v732_v8 }
 0x1b6   : > { %v697_v9 = vpop.permute.xlu0 %696  ;;  %v810_v10 = vpop.permute.xlu2 %809 }
 0x1b7   : > { %v699_v11 = vrot.slane %v697_v9, 4  ;;  %v802_v13 = vpop.permute.xlu1 %801  ;;  %812 = vst.msk [vmem:[#allocation2 + $0x14] sm:$0x3] %vm550_vm6, %v810_v10 }
 0x1b8   : > { %804 = vst.msk [vmem:[#allocation2 + $0x10] sm:$0x3] %vm542_vm7, %v802_v13 }
 0x1b9   : > { %v702_v14 = vsel %vm700_vm5, %v697_v9, %v699_v11 }
 0x1ba   : > { %706 = vst [vmem:[#allocation3 + $0x58] sm:$0xf] %v702_v14 }
 0x1be   : > { %v776_v15 = vpop.permute.xlu0 %775  ;;  %815 = sbr.rel (%p1428_p1) target bundleno = 453 (0x1c5), region = 183 }
 0x1bf   : > { %v778_v16 = vrot.slane %v776_v15, 4 }
 0x1c1   : > { %v781_v17 = vsel %vm779_vm0, %v776_v15, %v778_v16 }
 0x1c2   : > { %785 = vst [vmem:[#allocation3 + $0x88] sm:$0xf] %v781_v17 }
 0x1c3   : > { %v1721_v20 = vmov 0  }
 0x1c4   : > { %816 = vst.msk [vmem:[#allocation2 + $0x10] sm:$0x3] %vm542_vm7, %v1721_v20 }
 0x1c5 PF: > { %819 = sbr.rel (%p1429_p2) target bundleno = 460 (0x1cc), region = 187 }
 0x1ca   : > { %v1722_v21 = vmov 0  }
 0x1cb   : > { %820 = vst.msk [vmem:[#allocation2 + $0x14] sm:$0x3] %vm550_vm6, %v1722_v21 }
 0x1cc PF: > { %821 = vst.msk [vmem:[#allocation2 + $0x10] sm:$0xcc] %vm1901_vm14, %v1707_v26  ;;  %1625 = vset.pattern.permute.xlu1 %v1707_v26  ;;  %1626 = vset.pattern.permute.xlu2 %v1707_v26  ;;  %v1493_v27 = vld [vmem:[#allocation3 + $0x70] sm:$0xf]  ;;  %v1531_v30 = vld [vmem:[#allocation3 + $0x74] sm:$0xf0] }
 0x1cd   : > { %822 = vst.msk [vmem:[#allocation2 + $0x18] sm:$0xff] %vm1896_vm12, %v1707_v26  ;;  %1627 = vset.pattern.permute.xlu0 %v1707_v26  ;;  %v1485_v31 = vld [vmem:[#allocation3 + $0x60] sm:$0xf]  ;;  %v1529_v32 = vld [vmem:[#allocation3 + $0x64] sm:$0xf0]  ;;  %v1494_v33 = vor.u32 %v1531_v30, %v1493_v27  ;;  %vm2210_vm6 = vcmask 777216  }
 0x1ce   : > { %v1486_v35 = vor.u32 %v1529_v32, %v1485_v31  ;;  %v1477_v48 = vld [vmem:[#allocation3 + $0x50] sm:$0xf]  ;;  %v1527_v38 = vld [vmem:[#allocation3 + $0x54] sm:$0xf0]  ;;  %v1469_v40 = vld [vmem:[#allocation3 + $0x40] sm:$0xf] }
 0x1cf   : > { %1092 = vmatpush.bf16.msra.mxu0 %v1494_v33  ;;  %v1478_v39 = vor.u32 %v1527_v38, %v1477_v48  ;;  %v1525_v41 = vld [vmem:[#allocation3 + $0x44] sm:$0xf0]  ;;  %v1461_v43 = vld [vmem:[#allocation3 + $0x30] sm:$0xf]  ;;  %v1523_v44 = vld [vmem:[#allocation3 + $0x34] sm:$0xf0] }
 0x1d0   : > { %v1470_v42 = vor.u32 %v1525_v41, %v1469_v40  ;;  %v1462_v45 = vor.u32 %v1523_v44, %v1461_v43  ;;  %v1453_v46 = vld [vmem:[#allocation3 + $0x20] sm:$0xf]  ;;  %v1521_v47 = vld [vmem:[#allocation3 + $0x24] sm:$0xf0]  ;;  %v1445_v18 = vld [vmem:[#allocation3 + $0x10] sm:$0xf] }
 0x1d1   : > { %v1454_v49 = vor.u32 %v1521_v47, %v1453_v46  ;;  %v1519_v51 = vld [vmem:[#allocation3 + $0x14] sm:$0xf0]  ;;  %v1437_v54 = vld [vmem:[#allocation3] sm:$0xf]  ;;  %v1517_v55 = vld [vmem:[#allocation3 + $0x4] sm:$0xf0] }
 0x1d2   : > { %v1446_v53 = vor.u32 %v1519_v51, %v1445_v18  ;;  %v1438_v56 = vor.u32 %v1517_v55, %v1437_v54  ;;  %v967_v57 = vld [vmem:[%s2177_s3] sm:$0xff]  ;;  %v1533_v60 = vld [vmem:[#allocation3 + $0x84] sm:$0xf0]  ;;  %vm2211_vm7 = vmmov %vm2210_vm6  ;;  %vm2214_vm14 = vcmask 1039360  }
 0x1d3   : > { %v933_v22 = vld [vmem:[#allocation2 + $0x10] sm:$0xff]  ;;  %1093 = vmatpush.bf16.msra.mxu0 %v1486_v35  ;;  %v1501_v59 = vld [vmem:[#allocation3 + $0x80] sm:$0xf]  ;;  %v993_v61 = vunpack.c.l.b16 %v967_v57  ;;  %v994_v2 = vunpack.c.h.b16 %v967_v57 }
 0x1d4   : > { %937 = vrot.lane.b32.xlu0 %v933_v22, %s1715_s18  ;;  %v917_v23 = vsel %vm1979_vm11, %v933_v22, 0  ;;  %v899_v28 = vsel %vm1994_vm2, %v933_v22, 0  ;;  %v934_v24 = vld [vmem:[#allocation2 + $0x18] sm:$0xff]  ;;  %v865_v5 = vsel %vm1969_vm8, %v933_v22, 0  ;;  %v847_v36 = vsel %vm1952_vm9, %v933_v22, 0  ;;  %v986_v9 = vld [vmem:[%s2178_s4] sm:$0xff] }
 0x1d5   : > { %921 = vrot.lane.b32.xlu1 %v917_v23, %s1718_s10  ;;  %903 = vrot.lane.b32.xlu2 %v899_v28, %s1719_s23  ;;  %v918_v25 = vsel %vm1979_vm11, %v934_v24, 0  ;;  %v900_v26 = vsel %vm1994_vm2, %v934_v24, 0  ;;  %v866_v12 = vsel %vm1969_vm8, %v934_v24, 0  ;;  %v848_v37 = vsel %vm1952_vm9, %v934_v24, 0  ;;  %v824_v23 = vld [vmem:[#allocation2 + $0x18] sm:$0xf] }
 0x1d6   : > { %v951_v34 = vsel %vm2009_vm1, %v933_v22, 0  ;;  %v952_v1 = vsel %vm2009_vm1, %v934_v24, 0  ;;  %v1502_v63 = vor.u32 %v1533_v60, %v1501_v59  ;;  %v2103_v0 = vpack.c.b16 %v993_v61, %v993_v61 }
 0x1d7   : > { %1094 = vmatpush.bf16.msra.mxu0 %v1478_v39  ;;  %v2107_v4 = vpack.c.b16 %v994_v2, %v994_v2  ;;  %vm2212_vm8 = vcmask 908288   ;;  %vm1205_vm11 = vcmask 64512  }
 0x1d8   : > { %1112 = vmatpush.bf16.msra.mxu1 %v1502_v63  ;;  %vm2213_vm12 = vmmov %vm2212_vm8 }
 0x1db   : > { %1095 = vmatpush.bf16.msra.mxu0 %v1470_v42  ;;  %1507 = vmatmul.msk.bf16.vlgmr.msra.gmra.mxu1 %vm633_vm10, %v2107_v4 }
 0x1dc   : > { %939 = vrot.lane.b32.xlu0 %v934_v24, %s1715_s18 }
 0x1dd   : > { %923 = vrot.lane.b32.xlu1 %v918_v25, %s1718_s10  ;;  %905 = vrot.lane.b32.xlu2 %v900_v26, %s1719_s23  ;;  %v826_v25 = vsel %vm1914_vm15, %v824_v23, 0 }
 0x1de   : > { %828 = vst [vmem:[#allocation3 + $0xc] sm:$0xf] %v826_v25 }
 0x1df   : > { %1096 = vmatpush.bf16.msra.mxu0 %v1462_v45 }
 0x1e3   : > { %1097 = vmatpush.bf16.msra.mxu0 %v1454_v49 }
 0x1e4   : > { %885 = vrot.lane.b32.xlu0 %v933_v22, %s1714_s19 }
 0x1e5   : > { %887 = vrot.lane.b32.xlu1 %v934_v24, %s1714_s19  ;;  %869 = vrot.lane.b32.xlu2 %v865_v5, %s1717_s22  ;;  %s1513_s19 = sshll.u32 (%p1817_p10), %s1694_s28, 2 }
 0x1e7   : > { %1098 = vmatpush.bf16.msra.mxu0 %v1446_v53 }
 0x1eb   : > { %1099 = vmatpush.bf16.msra.mxu0 %v1438_v56 }
 0x1ec   : > { %871 = vrot.lane.b32.xlu0 %v866_v12, %s1717_s22  ;;  %s1255_s22 = scalar_lea.vmem (%p1817_p10), %s2181_s7, %s1513_s19 }
 0x1ed   : > { %851 = vrot.lane.b32.xlu1 %v847_v36, %s1716_s20  ;;  %853 = vrot.lane.b32.xlu2 %v848_v37, %s1716_s20 }
 0x1ee   : > { %1100 = vmatmul.bf16.vlgmr.msra.gmra.mxu0 %v2103_v0 }
 0x1f4   : > { %833 = vrot.lane.b32.xlu0 %v933_v22, %s1713_s13  ;;  %v823_v22 = vld [vmem:[#allocation2 + $0x10] sm:$0xf] }
 0x1f5   : > { %835 = vrot.lane.b32.xlu1 %v934_v24, %s1713_s13  ;;  %955 = vrot.lane.b32.xlu2 %v951_v34, %s1720_s24  ;;  %v825_v24 = vsel %vm1914_vm15, %v823_v22, 0  ;;  %vm2215_vm15 = vmmov %vm2214_vm14 }
 0x1f6   : > { %827 = vst [vmem:[#allocation3 + $0x4] sm:$0xf] %v825_v24 }
 0x1fc   : > { %957 = vrot.lane.b32.xlu0 %v952_v1, %s1720_s24 }
 0x1fd   : > { %989 = vperm.xlu1 %1625, %v986_v9  }
 0x22f   : > { %v904_v50 = vpop.permute.xlu2 %903 }
 0x230   : > { %v907_v19 = vrot.slane %v904_v50, 4 }
 0x232   : > { %v909_v52 = vsel %vm700_vm5, %v904_v50, %v907_v19 }
 0x233   : > { %913 = vst [vmem:[#allocation3 + $0x54] sm:$0xf] %v909_v52 }
 0x237   : > { %v906_v58 = vpop.permute.xlu2 %905 }
 0x238   : > { %v908_v62 = vrot.slane %v906_v58, 4 }
 0x23a   : > { %v910_v3 = vsel %vm700_vm5, %v906_v58, %v908_v62  ;;  %v1526_v46 = vld [vmem:[#allocation3 + $0x54] sm:$0xf] }
 0x23b   : > { %914 = vst [vmem:[#allocation3 + $0x5c] sm:$0xf] %v910_v3 }
 0x23f   : > { %v870_v6 = vpop.permute.xlu2 %869 }
 0x240   : > { %v873_v7 = vrot.slane %v870_v6, 4 }
 0x242   : > { %v875_v8 = vsel %vm652_vm4, %v870_v6, %v873_v7  ;;  %v1479_v47 = vld [vmem:[#allocation3 + $0x58] sm:$0xf0] }
 0x243   : > { %879 = vst [vmem:[#allocation3 + $0x34] sm:$0xf] %v875_v8  ;;  %v1482_v18 = vor.u32 %v1526_v46, %v1479_v47 }
 0x246   : > { %v938_v10 = vpop.permute.xlu0 %937 }
 0x247   : > { %v941_v11 = vrot.slane %v938_v10, 4  ;;  %v922_v13 = vpop.permute.xlu1 %921  ;;  %v854_v14 = vpop.permute.xlu2 %853 }
 0x248   : > { %v925_v15 = vrot.slane %v922_v13, 4  ;;  %v856_v16 = vrot.slane %v854_v14, 4 }
 0x249   : > { %v943_v17 = vsel %vm2210_vm6, %v938_v10, %v941_v11  ;;  %v1516_v10 = vld [vmem:[#allocation3 + $0x4] sm:$0xf] }
 0x24a   : > { %947 = vst [vmem:[#allocation3 + $0x74] sm:$0xf] %v943_v17  ;;  %v927_v20 = vsel %vm731_vm3, %v922_v13, %v925_v15  ;;  %v858_v21 = vsel %vm620_vm13, %v854_v14, %v856_v16  ;;  %v1522_v59 = vld [vmem:[#allocation3 + $0x34] sm:$0xf]  ;;  %v1439_v13 = vld [vmem:[#allocation3 + $0x8] sm:$0xf0] }
 0x24b   : > { %931 = vst [vmem:[#allocation3 + $0x64] sm:$0xf] %v927_v20  ;;  %v1442_v15 = vor.u32 %v1516_v10, %v1439_v13 }
 0x24c   : > { %862 = vst [vmem:[#allocation3 + $0x2c] sm:$0xf] %v858_v21 }
 0x24e   : > { %v940_v28 = vpop.permute.xlu0 %939 }
 0x24f   : > { %v942_v26 = vrot.slane %v940_v28, 4  ;;  %v924_v27 = vpop.permute.xlu1 %923  ;;  %v956_v30 = vpop.permute.xlu2 %955 }
 0x250   : > { %v926_v31 = vrot.slane %v924_v27, 4  ;;  %v959_v32 = vrot.slane %v956_v30, 4 }
 0x251   : > { %v944_v33 = vsel %vm2211_vm7, %v940_v28, %v942_v26  ;;  %v1530_v1 = vld [vmem:[#allocation3 + $0x74] sm:$0xf] }
 0x252   : > { %948 = vst [vmem:[#allocation3 + $0x7c] sm:$0xf] %v944_v33  ;;  %v928_v35 = vsel %vm731_vm3, %v924_v27, %v926_v31  ;;  %v961_v5 = vsel %vm779_vm0, %v956_v30, %v959_v32  ;;  %v1528_v41 = vld [vmem:[#allocation3 + $0x64] sm:$0xf] }
 0x253   : > { %932 = vst [vmem:[#allocation3 + $0x6c] sm:$0xf] %v928_v35  ;;  %v1455_v2 = vld [vmem:[#allocation3 + $0x28] sm:$0xf0] }
 0x254   : > { %965 = vst [vmem:[#allocation3 + $0x84] sm:$0xf] %v961_v5 }
 0x256   : > { %v886_v12 = vpop.permute.xlu0 %885 }
 0x257   : > { %v889_v36 = vrot.slane %v886_v12, 4  ;;  %v888_v29 = vpop.permute.xlu1 %887 }
 0x258   : > { %v890_v37 = vrot.slane %v888_v29, 4  ;;  %v1114_v28 = vpop.f32.mrf.mxu1 }
 0x259   : > { %v891_v34 = vsel %vm2212_vm8, %v886_v12, %v889_v36  ;;  %v1495_v48 = vld [vmem:[#allocation3 + $0x78] sm:$0xf0] }
 0x25a   : > { %895 = vst [vmem:[#allocation3 + $0x44] sm:$0xf] %v891_v34  ;;  %v892_v38 = vsel %vm2213_vm12, %v888_v29, %v890_v37  ;;  %v1498_v39 = vor.u32 %v1530_v1, %v1495_v48  ;;  %v1487_v40 = vld [vmem:[#allocation3 + $0x68] sm:$0xf0] }
 0x25b   : > { %896 = vst [vmem:[#allocation3 + $0x4c] sm:$0xf] %v892_v38  ;;  %v1490_v43 = vor.u32 %v1528_v41, %v1487_v40  ;;  %v1532_v16 = vld [vmem:[#allocation3 + $0x84] sm:$0xf] }
 0x25c   : > { %1118 = vmatpush.bf16.msra.mxu2 %v1498_v39 }
 0x25e   : > { %v872_v42 = vpop.permute.xlu0 %871 }
 0x25f   : > { %v874_v44 = vrot.slane %v872_v42, 4  ;;  %v852_v45 = vpop.permute.xlu1 %851 }
 0x260   : > { %v855_v49 = vrot.slane %v852_v45, 4  ;;  %1119 = vmatpush.bf16.msra.mxu2 %v1490_v43  ;;  %v1116_v31 = vpop.f32.mrf.mxu1 }
 0x261   : > { %v876_v50 = vsel %vm652_vm4, %v872_v42, %v874_v44  ;;  %v1524_v51 = vld [vmem:[#allocation3 + $0x44] sm:$0xf] }
 0x262   : > { %880 = vst [vmem:[#allocation3 + $0x3c] sm:$0xf] %v876_v50  ;;  %v857_v19 = vsel %vm620_vm13, %v852_v45, %v855_v49  ;;  %v1471_v52 = vld [vmem:[#allocation3 + $0x48] sm:$0xf0] }
 0x263   : > { %861 = vst [vmem:[#allocation3 + $0x24] sm:$0xf] %v857_v19  ;;  %v1474_v54 = vor.u32 %v1524_v51, %v1471_v52 }
 0x264   : > { %1120 = vmatpush.bf16.msra.mxu2 %v1482_v18 }
 0x266   : > { %v834_v53 = vpop.permute.xlu0 %833 }
 0x267   : > { %v837_v55 = vrot.slane %v834_v53, 4  ;;  %v836_v56 = vpop.permute.xlu1 %835 }
 0x268   : > { %v838_v57 = vrot.slane %v836_v56, 4  ;;  %1121 = vmatpush.bf16.msra.mxu2 %v1474_v54 }
 0x269   : > { %v839_v58 = vsel %vm2214_vm14, %v834_v53, %v837_v55  ;;  %v1463_v60 = vld [vmem:[#allocation3 + $0x38] sm:$0xf0] }
 0x26a   : > { %843 = vst [vmem:[#allocation3 + $0x14] sm:$0xf] %v839_v58  ;;  %v840_v61 = vsel %vm2215_vm15, %v836_v56, %v838_v57  ;;  %v1466_v62 = vor.u32 %v1522_v59, %v1463_v60  ;;  %v1520_v63 = vld [vmem:[#allocation3 + $0x24] sm:$0xf] }
 0x26b   : > { %844 = vst [vmem:[#allocation3 + $0x1c] sm:$0xf] %v840_v61  ;;  %v1458_v6 = vor.u32 %v1520_v63, %v1455_v2  ;;  %v1101_v22 = vpop.f32.mrf.mxu0  ;;  %v1196_v61 = vld [vmem:[%s2179_s5] sm:$0x3] }
 0x26c   : > { %1122 = vmatpush.bf16.msra.mxu2 %v1466_v62  ;;  %v1199_v2 = vld [vmem:[%s2180_s6] sm:$0xf] }
 0x26d   : > { %1202 = vperm.xlu2 %1626, %v1199_v2  }
 0x26e   : > { %v958_v3 = vpop.permute.xlu0 %957 }
 0x26f   : > { %v960_v7 = vrot.slane %v958_v3, 4  ;;  %v990_v21 = vpop.permute.xlu1 %989 }
 0x270   : > { %1123 = vmatpush.bf16.msra.mxu2 %v1458_v6  ;;  %v1102_v23 = vadd.f32 %v1101_v22, %v990_v21 }
 0x271   : > { %v962_v8 = vsel %vm779_vm0, %v958_v3, %v960_v7  ;;  %v1518_v9 = vld [vmem:[#allocation3 + $0x14] sm:$0xf] }
 0x272   : > { %966 = vst [vmem:[#allocation3 + $0x8c] sm:$0xf] %v962_v8  ;;  %v1447_v11 = vld [vmem:[#allocation3 + $0x18] sm:$0xf0]  ;;  %v1115_v24 = vadd.f32 %v1114_v28, %v1102_v23 }
 0x273   : > { %v1450_v14 = vor.u32 %v1518_v9, %v1447_v11  ;;  %v1103_v27 = vpop.f32.mrf.mxu0 }
 0x274   : > { %v1146_v25 = vmul.f32 0.70710677, %v1115_v24  ;;  %v1144_v43 = vmul.f32 0.5, %v1115_v24 }
 0x275   : > { %1124 = vmatpush.bf16.msra.mxu2 %v1450_v14 }
 0x276   : > { %v1148_v26 = vand.u32 2147483647, %v1146_v25  ;;  %vm1186_vm9 = vcmp.lt.f32.partialorder %v1146_v25, 0.0 }
 0x278   : > { %v1150_v30 = vmul.f32 0.3275911, %v1148_v26  ;;  %v1174_v33 = vsub.f32 0.0, %v1148_v26 }
 0x279   : > { %1125 = vmatpush.bf16.msra.mxu2 %v1442_v15  ;;  %v1503_v17 = vld [vmem:[#allocation3 + $0x88] sm:$0xf0] }
 0x27a   : > { %v1506_v20 = vor.u32 %v1532_v16, %v1503_v17  ;;  %v1152_v32 = vadd.f32 1.0, %v1150_v30 }
 0x27c   : > { %1126 = vmatmul.bf16.vlgmr.msra.gmra.mxu2 %v2103_v0  ;;  %1138 = vmatpush.bf16.msra.mxu3 %v1506_v20  ;;  %1628 = vrcp.f32 %v1152_v32  ;;  %v1176_v0 = vmul.f32 %v1174_v33, %v1148_v26 }
 0x27e   : > { %v1178_v29 = vmul.f32 1.442695, %v1176_v0 }
 0x27f   : > { %1508 = vmatmul.msk.bf16.vlgmr.msra.gmra.mxu3 %vm633_vm10, %v2107_v4  ;;  %vm2216_vm10 = vcmask 1043456  }
 0x280   : > { %1630 = vpow2.f32 %v1178_v29  ;;  %vm2217_vm2 = vmmov %vm2216_vm10 }
 0x282   : > { %v1629_v35 = vpop.eup %1628 }
 0x283   : > { %v1156_v5 = vmul.f32 1.0614054, %v1629_v35 }
 0x285   : > { %v1158_v12 = vadd.f32 -1.4531521, %v1156_v5 }
 0x286   : > { %v1631_v38 = vpop.eup %1630 }
 0x287   : > { %v1160_v36 = vmul.f32 %v1629_v35, %v1158_v12 }
 0x289   : > { %v1162_v4 = vadd.f32 1.4214138, %v1160_v36 }
 0x28b   : > { %v1164_v37 = vmul.f32 %v1629_v35, %v1162_v4 }
 0x28d   : > { %v1166_v34 = vadd.f32 -0.28449672, %v1164_v37 }
 0x28f   : > { %v1168_v1 = vmul.f32 %v1629_v35, %v1166_v34 }
 0x291   : > { %v1170_v48 = vadd.f32 0.2548296, %v1168_v1 }
 0x293   : > { %v1172_v39 = vmul.f32 %v1629_v35, %v1170_v48 }
 0x295   : > { %v1182_v40 = vmul.f32 %v1631_v38, %v1172_v39 }
 0x297   : > { %v1184_v41 = vsub.f32 1.0, %v1182_v40 }
 0x299   : > { %v1188_v42 = vsub.f32 0.0, %v1184_v41 }
 0x29b   : > { %v1190_v44 = vsel %vm1186_vm9, %v1188_v42, %v1184_v41 }
 0x29c   : > { %v1192_v45 = vadd.f32 1.0, %v1190_v44 }
 0x29e   : > { %v1194_v46 = vmul.f32 %v1192_v45, %v1144_v43 }
 0x2a0   : > { %v1197_v47 = vpack.c.bf16 %v1194_v46, %v1194_v46 }
 0x2a2   : > { %v1210_v49 = vsel %vm2216_vm10, %v1197_v47, 0 }
 0x2a3   : > { %1222 = vmatpush.bf16.msrb.mxu1 %v1210_v49 }
 0x2a6   : > { %1509 = vmatmul.msk.bf16.vlgmr.msrb.gmra.mxu1 %vm1205_vm11, %v1196_v61 }
 0x2c7   : > { %v1203_v26 = vpop.permute.xlu2 %1202 }
 0x2ff   : > { %v1127_v50 = vpop.f32.mrf.mxu2 }
 0x300   : > { %v1128_v19 = vadd.f32 %v1127_v50, %v990_v21 }
 0x302   : > { %v1140_v18 = vpop.f32.mrf.mxu3 }
 0x303   : > { %v1141_v51 = vadd.f32 %v1140_v18, %v1128_v19 }
 0x305   : > { %v1147_v52 = vmul.f32 0.70710677, %v1141_v51  ;;  %v1145_v21 = vmul.f32 0.5, %v1141_v51 }
 0x307   : > { %v1149_v53 = vand.u32 2147483647, %v1147_v52  ;;  %v1129_v54 = vpop.f32.mrf.mxu2  ;;  %vm1187_vm13 = vcmp.lt.f32.partialorder %v1147_v52, 0.0 }
 0x309   : > { %v1151_v55 = vmul.f32 0.3275911, %v1149_v53  ;;  %v1175_v59 = vsub.f32 0.0, %v1149_v53 }
 0x30a   : > { %v1142_v56 = vpop.f32.mrf.mxu3 }
 0x30b   : > { %v1153_v57 = vadd.f32 1.0, %v1151_v55  ;;  %v1177_v63 = vmul.f32 %v1175_v59, %v1149_v53 }
 0x30d   : > { %1632 = vrcp.f32 %v1153_v57  ;;  %v1180_v7 = vmul.f32 1.442695, %v1177_v63 }
 0x30f   : > { %1634 = vpow2.f32 %v1180_v7 }
 0x313   : > { %v1633_v58 = vpop.eup %1632 }
 0x314   : > { %v1157_v60 = vmul.f32 1.0614054, %v1633_v58 }
 0x315   : > { %v1635_v14 = vpop.eup %1634 }
 0x316   : > { %v1159_v62 = vadd.f32 -1.4531521, %v1157_v60 }
 0x318   : > { %v1161_v3 = vmul.f32 %v1633_v58, %v1159_v62 }
 0x31a   : > { %v1163_v6 = vadd.f32 1.4214138, %v1161_v3 }
 0x31c   : > { %v1165_v8 = vmul.f32 %v1633_v58, %v1163_v6 }
 0x31e   : > { %v1167_v9 = vadd.f32 -0.28449672, %v1165_v8 }
 0x320   : > { %v1169_v10 = vmul.f32 %v1633_v58, %v1167_v9 }
 0x322   : > { %v1171_v11 = vadd.f32 0.2548296, %v1169_v10 }
 0x323   : > { %v1224_v25 = vpop.f32.mrf.mxu1 }
 0x324   : > { %v1173_v13 = vmul.f32 %v1633_v58, %v1171_v11  ;;  %v1225_v30 = vadd.f32 %v1224_v25, %v1203_v26 }
 0x326   : > { %v1183_v15 = vmul.f32 %v1635_v14, %v1173_v13  ;;  %1241 = vst [vmem:[%s1882_s27] sm:$0xf] %v1225_v30 }
 0x328   : > { %v1185_v16 = vsub.f32 1.0, %v1183_v15 }
 0x32a   : > { %v1189_v17 = vsub.f32 0.0, %v1185_v16 }
 0x32b   : > { %v1226_v27 = vpop.f32.mrf.mxu1 }
 0x32c   : > { %v1191_v20 = vsel %vm1187_vm13, %v1189_v17, %v1185_v16 }
 0x32d   : > { %v1193_v22 = vadd.f32 1.0, %v1191_v20  ;;  %v1272_v35 = vld [vmem:[%s1882_s27] sm:$0xf] (%p1817_p10) }
 0x32e   : > { %1273 = vst [vmem:[%s1255_s22] sm:$0xf] (%p1817_p10), %v1272_v35 }
 0x32f   : > { %v1195_v23 = vmul.f32 %v1193_v22, %v1145_v21 }
 0x331   : > { %v1198_v28 = vpack.c.bf16 %v1195_v23, %v1195_v23 }
 0x333   : > { %v1213_v24 = vsel %vm2217_vm2, %v1198_v28, 0 }
 0x334   : > { %1235 = vmatpush.bf16.msrb.mxu3 %v1213_v24 }
 0x337   : > { %1510 = vmatmul.msk.bf16.vlgmr.msrb.gmra.mxu3 %vm1205_vm11, %v1196_v61 }
 0x3ba   : > { %v1237_v31 = vpop.f32.mrf.mxu3 }
 0x3bb   : > { %v1238_v32 = vadd.f32 %v1237_v31, %v1203_v26 }
 0x3bd   : > { %1511 = vst [vmem:[%s1882_s27 + $0x4] sm:$0xf] %v1238_v32 }
 0x3be   : > { %1250 = sbr.rel (!%p1817_p10) target bundleno = 966 (0x3c6), region = 191 }
 0x3c2   : > { %v1239_v33 = vpop.f32.mrf.mxu3 }
 0x3c4   : > { %v1274_v5 = vld [vmem:[%s1882_s27 + $0x4] sm:$0xf] }
 0x3c5   : > { %1275 = vst [vmem:[%s1255_s22 + $0x8] sm:$0xf] %v1274_v5 }
 0x3c6 PF: > { %s17_s30 = sadd.s32 1, %s1702_s30   ;;  %s2156_s24 = smov 0  }
 0x3c7   : > { %p14_p3 = scmp.ge.s32.totalorder %s17_s30, 4   ;;  %s2218_s25 = smov %s1686_s26 }
 0x3c8   : > { %s2219_s26 = smov %s1810_s12  ;;  %s2164_s27 = smov 0  }
 0x3c9   : > { %s2220_s28 = smov %s1698_s29  ;;  %s2221_s29 = smov %s2223_s9 }
 0x3ca   :  { %16 = sbr.rel (!%p14_p3) target bundleno = 4 (0x4), region = 284 }

</bundles_post_ra>
